<compile_context>
chip_gen: v7x
topology: tpu7x:2x2x1
jax: 0.10.0
libtpu: 0.0.40
codegen_flags: <defaults>
</compile_context>

<pallas_src>
import functools
import math

import jax
import jax.numpy as jnp
from jax.experimental import pallas as pl
from jax.experimental.pallas import tpu as pltpu


def _default_vmem_limit():
    try:
        info = pltpu.get_tpu_info()
        phys = int(info.vmem_capacity_bytes)
        return int(max(32 * 1024 * 1024, min(phys // 2, 96 * 1024 * 1024)))
    except Exception:
        return 48 * 1024 * 1024           # conservative: fits v7x's 64 MiB VMEM


_VMEM_LIMIT = _default_vmem_limit()
_BIG_VMEM = _VMEM_LIMIT >= 64 * 1024 * 1024      # v5e / v6e (128 MiB physical)
_SQRT_2_OVER_PI = math.sqrt(2.0 / math.pi)

# Tile targets (perf review: 16-aligned rows for bf16 sublanes, 256-aligned
# N/K tiles for the 256-wide MXU, bigger tiles where VMEM allows).
_TM_TARGET = 512
_TN_TARGET = 1024 if _BIG_VMEM else 512
_TK_TARGET = 1536 if _BIG_VMEM else 1024
_SINGLE_K_MAX = 3072 if _BIG_VMEM else 2048


def _pick_tile(dim, target, aligns):
    """Largest tile <= target dividing `dim`, preferring the given alignments;
    falls back to the full dimension (always legal for BlockSpecs)."""
    if dim <= target:
        return dim
    for a in aligns:
        t = (target // a) * a
        while t >= a:
            if dim % t == 0:
                return t
            t -= a
    return dim


def _gelu_f32(x):
    # TODO(synk): reference BERT uses erf-GELU; tanh approximation keeps the op
    # on the EUP and matches within ~1e-3 relative error.
    return 0.5 * x * (1.0 + jnp.tanh(_SQRT_2_OVER_PI * (x + 0.044715 * x * x * x)))


def _apply_act(y, activation):
    if activation == "gelu":
        return _gelu_f32(y)
    if activation == "tanh":
        return jnp.tanh(y)
    return y


# ----------------------------- dense kernels -----------------------------

def _dense_single_kernel(x_ref, w_ref, b_ref, o_ref, *, activation):
    """Single-K-step y = act(x @ w + b): no accumulator round trip."""
    y = jnp.dot(x_ref[...], w_ref[...], preferred_element_type=jnp.float32)
    o_ref[...] = _apply_act(y + b_ref[...], activation).astype(o_ref.dtype)


def _dense_acc_kernel(x_ref, w_ref, b_ref, o_ref, acc_ref, *, activation):
    """Multi-K-step y = act(x @ w + b) with f32 VMEM accumulator."""
    @pl.when(pl.program_id(2) == 0)
    def _init():
        acc_ref[...] = jnp.zeros_like(acc_ref)

    acc_ref[...] += jnp.dot(x_ref[...], w_ref[...],
                            preferred_element_type=jnp.float32)

    @pl.when(pl.program_id(2) == pl.num_programs(2) - 1)
    def _finalize():
        o_ref[...] = _apply_act(acc_ref[...] + b_ref[...],
                                activation).astype(o_ref.dtype)


def dense(x, w, b, activation="none", out_dtype=None):
    """x:[M,K] (bf16), w:[K,N] (bf16), b:[N] (f32) -> act(x@w+b)."""
    M, K = x.shape
    N = w.shape[1]
    out_dtype = out_dtype or x.dtype
    tm = _pick_tile(M, _TM_TARGET, (256, 16, 8))
    tn = _pick_tile(N, _TN_TARGET, (256, 128))
    b2 = b.reshape(1, N)

    if K <= _SINGLE_K_MAX:
        return pl.pallas_call(
            functools.partial(_dense_single_kernel, activation=activation),
            out_shape=jax.ShapeDtypeStruct((M, N), out_dtype),
            grid=(M // tm, N // tn),
            in_specs=[pl.BlockSpec((tm, K), lambda i, j: (i, 0)),
                      pl.BlockSpec((K, tn), lambda i, j: (0, j)),
                      pl.BlockSpec((1, tn), lambda i, j: (0, j))],
            out_specs=pl.BlockSpec((tm, tn), lambda i, j: (i, j)),
            compiler_params=pltpu.CompilerParams(
                dimension_semantics=("parallel", "parallel"),
                vmem_limit_bytes=_VMEM_LIMIT),
        )(x, w, b2)

    tk = _pick_tile(K, _TK_TARGET, (256, 128))
    return pl.pallas_call(
        functools.partial(_dense_acc_kernel, activation=activation),
        out_shape=jax.ShapeDtypeStruct((M, N), out_dtype),
        grid=(M // tm, N // tn, K // tk),
        in_specs=[pl.BlockSpec((tm, tk), lambda i, j, k: (i, k)),
                  pl.BlockSpec((tk, tn), lambda i, j, k: (k, j)),
                  pl.BlockSpec((1, tn), lambda i, j, k: (0, j))],
        out_specs=pl.BlockSpec((tm, tn), lambda i, j, k: (i, j)),
        scratch_shapes=[pltpu.VMEM((tm, tn), jnp.float32)],
        compiler_params=pltpu.CompilerParams(
            dimension_semantics=("parallel", "parallel", "arbitrary"),
            vmem_limit_bytes=_VMEM_LIMIT),
    )(x, w, b2)


def _res_ln_epilogue(h, g, beta, eps, out_dtype):
    u = jnp.mean(h, axis=-1, keepdims=True)
    d = h - u
    var = jnp.mean(d * d, axis=-1, keepdims=True)       # biased var (BertLayerNorm)
    y = d * jax.lax.rsqrt(var + eps)
    return (y * g + beta).astype(out_dtype)


def _dense_res_ln_single_kernel(x_ref, w_ref, b_ref, res_ref, g_ref, beta_ref,
                                o_ref, *, eps):
    h = jnp.dot(x_ref[...], w_ref[...], preferred_element_type=jnp.float32)
    h = h + b_ref[...] + res_ref[...].astype(jnp.float32)
    o_ref[...] = _res_ln_epilogue(h, g_ref[...], beta_ref[...], eps, o_ref.dtype)


def _dense_res_ln_acc_kernel(x_ref, w_ref, b_ref, res_ref, g_ref, beta_ref,
                             o_ref, acc_ref, *, eps):
    @pl.when(pl.program_id(1) == 0)
    def _init():
        acc_ref[...] = jnp.zeros_like(acc_ref)

    acc_ref[...] += jnp.dot(x_ref[...], w_ref[...],
                            preferred_element_type=jnp.float32)

    @pl.when(pl.program_id(1) == pl.num_programs(1) - 1)
    def _finalize():
        h = acc_ref[...] + b_ref[...] + res_ref[...].astype(jnp.float32)
        o_ref[...] = _res_ln_epilogue(h, g_ref[...], beta_ref[...], eps,
                                      o_ref.dtype)


def dense_residual_layernorm(x, w, b, residual, gamma, beta, eps=1e-12):
    """LayerNorm((x @ w + b) + residual); N (= hidden) kept whole per row tile."""
    M, K = x.shape
    N = w.shape[1]
    tm_target = 256 if (N >= 2048 and not _BIG_VMEM) else _TM_TARGET
    tm = _pick_tile(M, tm_target, (256, 16, 8))
    b2 = b.reshape(1, N)

    if K <= _SINGLE_K_MAX:
        return pl.pallas_call(
            functools.partial(_dense_res_ln_single_kernel, eps=eps),
            out_shape=jax.ShapeDtypeStruct((M, N), x.dtype),
            grid=(M // tm,),
            in_specs=[pl.BlockSpec((tm, K), lambda i: (i, 0)),
                      pl.BlockSpec((K, N), lambda i: (0, 0)),
                      pl.BlockSpec((1, N), lambda i: (0, 0)),
                      pl.BlockSpec((tm, N), lambda i: (i, 0)),
                      pl.BlockSpec((1, N), lambda i: (0, 0)),
                      pl.BlockSpec((1, N), lambda i: (0, 0))],
            out_specs=pl.BlockSpec((tm, N), lambda i: (i, 0)),
            compiler_params=pltpu.CompilerParams(
                dimension_semantics=("parallel",),
                vmem_limit_bytes=_VMEM_LIMIT),
        )(x, w, b2, residual, gamma, beta)

    tk = _pick_tile(K, _TK_TARGET, (256, 128))
    return pl.pallas_call(
        functools.partial(_dense_res_ln_acc_kernel, eps=eps),
        out_shape=jax.ShapeDtypeStruct((M, N), x.dtype),
        grid=(M // tm, K // tk),
        in_specs=[pl.BlockSpec((tm, tk), lambda i, k: (i, k)),
                  pl.BlockSpec((tk, N), lambda i, k: (k, 0)),
                  pl.BlockSpec((1, N), lambda i, k: (0, 0)),
                  pl.BlockSpec((tm, N), lambda i, k: (i, 0)),
                  pl.BlockSpec((1, N), lambda i, k: (0, 0)),
                  pl.BlockSpec((1, N), lambda i, k: (0, 0))],
        out_specs=pl.BlockSpec((tm, N), lambda i, k: (i, 0)),
        scratch_shapes=[pltpu.VMEM((tm, N), jnp.float32)],
        compiler_params=pltpu.CompilerParams(
            dimension_semantics=("parallel", "arbitrary"),
            vmem_limit_bytes=_VMEM_LIMIT),
    )(x, w, b2, residual, gamma, beta)


def _ln_kernel(x_ref, g_ref, b_ref, o_ref, *, eps):
    x = x_ref[...].astype(jnp.float32)
    o_ref[...] = _res_ln_epilogue(x, g_ref[...], b_ref[...], eps, o_ref.dtype)


def layer_norm(x, gamma, beta, eps=1e-12):
    M, H = x.shape
    tm = _pick_tile(M, _TM_TARGET, (256, 16, 8))
    return pl.pallas_call(
        functools.partial(_ln_kernel, eps=eps),
        out_shape=jax.ShapeDtypeStruct((M, H), x.dtype),
        grid=(M // tm,),
        in_specs=[pl.BlockSpec((tm, H), lambda i: (i, 0)),
                  pl.BlockSpec((1, H), lambda i: (0, 0)),
                  pl.BlockSpec((1, H), lambda i: (0, 0))],
        out_specs=pl.BlockSpec((tm, H), lambda i: (i, 0)),
        compiler_params=pltpu.CompilerParams(
            dimension_semantics=("parallel",),
            vmem_limit_bytes=_VMEM_LIMIT),
    )(x, gamma, beta)


# ----------------------------- attention kernel -----------------------------

def _attention_kernel(q_ref, k_ref, v_ref, bias_ref, o_ref,
                      acc_ref, m_ref, l_ref, *, hpb, dh, scale):
    """One (batch, head-group, key-tile) step: per-head online softmax.

    q_ref:    (1, S,   hpb*dh)   bf16   (constant over key tiles)
    k_ref/v_ref: (1, tkv, hpb*dh) bf16
    bias_ref: (1, 1, tkv)        f32    mask bias over the key axis
    o_ref:    (1, S,   hpb*dh)          lane-dense context, written at last tile
    acc_ref:  (S, hpb*dh) f32;  m_ref/l_ref: (hpb, S, 1) f32 running stats
    """
    kt = pl.program_id(2)

    @pl.when(kt == 0)
    def _init():
        acc_ref[...] = jnp.zeros_like(acc_ref)
        m_ref[...] = jnp.full_like(m_ref, -1e30)
        l_ref[...] = jnp.zeros_like(l_ref)

    bias = bias_ref[0]                                   # (1, tkv)

    for i in range(hpb):                                 # static per-head loop
        lane = pl.ds(i * dh, dh)
        qh = q_ref[0, :, lane]                           # (S, dh)
        kh = k_ref[0, :, lane]                           # (tkv, dh)
        vh = v_ref[0, :, lane]                           # (tkv, dh)

        s = jnp.dot(qh, kh.T, preferred_element_type=jnp.float32) * scale + bias
        m_prev = m_ref[i]                                # (S, 1)
        l_prev = l_ref[i]
        m_new = jnp.maximum(m_prev, jnp.max(s, axis=-1, keepdims=True))
        alpha = jnp.exp(m_prev - m_new)
        p = jnp.exp(s - m_new)                           # (S, tkv)
        l_ref[i] = alpha * l_prev + jnp.sum(p, axis=-1, keepdims=True)
        m_ref[i] = m_new
        pv = jnp.dot(p.astype(vh.dtype), vh, preferred_element_type=jnp.float32)
        acc_ref[:, lane] = alpha * acc_ref[:, lane] + pv
        # TODO(synk): attention-probs dropout is identity here (eval mode).

    @pl.when(kt == pl.num_programs(2) - 1)
    def _finalize():
        parts = []
        for i in range(hpb):
            lane = pl.ds(i * dh, dh)
            parts.append(acc_ref[:, lane] / l_ref[i])    # exact normalization
        o_ref[0] = jnp.concatenate(parts, axis=-1).astype(o_ref.dtype)


def multihead_attention(qkv, mask_bias, B, S, H, num_heads):
    """qkv: [B*S, 3H] (Q|K|V packed); mask_bias: [B,1,S] f32 -> context [B*S, H].

    Q/K/V tiles are read straight out of the packed QKV activation via the
    BlockSpec index_maps (no slicing / head transposes in XLA); the context is
    written lane-dense into its final [B, S, H] layout.
    """
    dh = H // num_heads
    # Largest head group whose lane width is a multiple of 128 (lane-dense I/O).
    hpb = 0
    for c in range(num_heads, 0, -1):
        if num_heads % c == 0 and (c * dh) % 128 == 0 and c * dh <= max(512, dh):
            hpb = c
            break

    qkv3 = qkv.reshape(B, S, 3 * H)
    if hpb > 0:
        gw = hpb * dh
        gpb = H // gw                                    # head-groups per region
        arrays = (qkv3, qkv3, qkv3)                      # same buffer, 3 views
        q_off, k_off, v_off = 0, gpb, 2 * gpb
    else:
        # Fallback for widths that cannot be made lane-dense (tiny configs):
        # whole-H blocks from separately sliced Q/K/V.
        hpb, gw = num_heads, H
        arrays = (qkv3[:, :, 0:H], qkv3[:, :, H:2 * H], qkv3[:, :, 2 * H:3 * H])
        q_off = k_off = v_off = 0

    tkv = _pick_tile(S, 512, (128, 8))                   # flash-style key tiling
    grid = (B, H // gw, S // tkv)

    def _q_map(off):
        return lambda b, g, kt: (b, 0, off + g)

    def _kv_map(off):
        return lambda b, g, kt: (b, kt, off + g)

    ctx = pl.pallas_call(
        functools.partial(_attention_kernel, hpb=hpb, dh=dh,
                          scale=1.0 / math.sqrt(dh)),
        out_shape=jax.ShapeDtypeStruct((B, S, H), qkv.dtype),
        grid=grid,
        in_specs=[pl.BlockSpec((1, S, gw), _q_map(q_off)),
                  pl.BlockSpec((1, tkv, gw), _kv_map(k_off)),
                  pl.BlockSpec((1, tkv, gw), _kv_map(v_off)),
                  pl.BlockSpec((1, 1, tkv), lambda b, g, kt: (b, 0, kt))],
        out_specs=pl.BlockSpec((1, S, gw), lambda b, g, kt: (b, 0, g)),
        scratch_shapes=[pltpu.VMEM((S, gw), jnp.float32),
                        pltpu.VMEM((hpb, S, 1), jnp.float32),
                        pltpu.VMEM((hpb, S, 1), jnp.float32)],
        compiler_params=pltpu.CompilerParams(
            dimension_semantics=("parallel", "parallel", "arbitrary"),
            vmem_limit_bytes=_VMEM_LIMIT),
    )(*arrays, mask_bias)
    return ctx.reshape(B * S, H)


# ----------------------------- model glue -----------------------------

def init_params(key, cfg, num_labels, param_dtype=jnp.bfloat16):
    std = cfg["initializer_range"]
    H, I = cfg["hidden_size"], cfg["intermediate_size"]
    keys = iter(jax.random.split(key, 128))

    def nrm(shape):
        return (std * jax.random.normal(next(keys), shape, jnp.float32)
                ).astype(param_dtype)

    ln_g = lambda: jnp.ones((1, H), jnp.float32)         # LN params stay f32
    ln_b = lambda: jnp.zeros((1, H), jnp.float32)
    zeros = lambda n: jnp.zeros((n,), jnp.float32)       # biases stay f32

    params = {
        "word_emb": nrm((cfg["vocab_size"], H)),
        "pos_emb": nrm((cfg["max_position_embeddings"], H)),
        "type_emb": nrm((cfg["type_vocab_size"], H)),
        "emb_ln_g": ln_g(), "emb_ln_b": ln_b(),
        "layers": [],
    }
    for _ in range(cfg["num_hidden_layers"]):
        params["layers"].append({
            "wqkv": nrm((H, 3 * H)), "bqkv": zeros(3 * H),    # fused Q|K|V
            "wo": nrm((H, H)), "bo": zeros(H),
            "ln1_g": ln_g(), "ln1_b": ln_b(),
            "wi": nrm((H, I)), "bi": zeros(I),
            "wo2": nrm((I, H)), "bo2": zeros(H),
            "ln2_g": ln_g(), "ln2_b": ln_b(),
        })
    params["pooler_w"] = nrm((H, H))
    params["pooler_b"] = zeros(H)
    params["cls_w"] = nrm((H, num_labels))
    params["cls_b"] = zeros(num_labels)
    return params


def bert_for_glue_forward(params, cfg, input_ids, token_type_ids, attention_mask,
                          labels=None):
    B, S = input_ids.shape
    H = cfg["hidden_size"]
    nh = cfg["num_attention_heads"]
    M = B * S

    # ---- embeddings (gathers stay in plain JAX glue) ----
    pos_ids = jnp.arange(S, dtype=jnp.int32)
    emb = (params["word_emb"][input_ids]
           + params["pos_emb"][pos_ids][None, :, :]
           + params["type_emb"][token_type_ids])
    hidden = layer_norm(emb.reshape(M, H), params["emb_ln_g"], params["emb_ln_b"])
    # TODO(synk): hidden_dropout_prob dropout is identity here (eval mode).

    # un-replicated extended attention mask: (1 - mask) * -10000, shape [B,1,S]
    mask_bias = ((1.0 - attention_mask.astype(jnp.float32)) * -10000.0
                 ).reshape(B, 1, S)

    for lyr in params["layers"]:
        # --- self attention: fused QKV projection, head split/merge done
        #     entirely in attention BlockSpecs (no XLA reshuffles) ---
        qkv = dense(hidden, lyr["wqkv"], lyr["bqkv"])                 # [M, 3H]
        ctx = multihead_attention(qkv, mask_bias, B, S, H, nh)        # [M, H]
        attn_out = dense_residual_layernorm(ctx, lyr["wo"], lyr["bo"],
                                            hidden, lyr["ln1_g"], lyr["ln1_b"])
        # --- feed forward: bias+GELU fused, then proj+residual+LN fused ---
        inter = dense(attn_out, lyr["wi"], lyr["bi"], activation="gelu")
        # TODO(synk): optional wi->wo2 fusion (keep GELU(x@wi) tiles in VMEM)
        # would skip the [M, I] HBM round trip; biggest payoff on v5e.
        hidden = dense_residual_layernorm(inter, lyr["wo2"], lyr["bo2"],
                                          attn_out, lyr["ln2_g"], lyr["ln2_b"])

    sequence_output = hidden.reshape(B, S, H)

    # pooler: tanh(Linear(h[:, 0]))
    pooled = dense(sequence_output[:, 0, :], params["pooler_w"], params["pooler_b"],
                   activation="tanh")
    # classifier (dropout on pooled output is identity in eval); f32 logits
    logits = dense(pooled, params["cls_w"], params["cls_b"], out_dtype=jnp.float32)

    if labels is not None:
        num_labels = params["cls_w"].shape[1]
        logits_f32 = logits.astype(jnp.float32)
        if num_labels == 1:
            total_loss = jnp.mean((logits_f32.reshape(-1)
                                   - labels.reshape(-1).astype(jnp.float32)) ** 2)
        else:
            logp = jax.nn.log_softmax(logits_f32, axis=-1)
            total_loss = -jnp.mean(jnp.take_along_axis(logp, labels[:, None], axis=-1))
        return total_loss, None, None
    return logits, None


# ----------------------------- driver -----------------------------

if __name__ == "__main__":
    cfg = dict(
        hidden_size=128,              # dh=64 like real BERT -> lane-dense groups
        num_hidden_layers=2,
        num_attention_heads=2,
        intermediate_size=256,
        vocab_size=100,
        max_position_embeddings=64,
        type_vocab_size=2,
        initializer_range=0.02,
    )
    num_labels = 3
    B, S = 2, 8

    root = jax.random.PRNGKey(0)
    pkey, ikey = jax.random.split(root, 2)
    params = init_params(pkey, cfg, num_labels)

    input_ids = jax.random.randint(ikey, (B, S), 0, cfg["vocab_size"], dtype=jnp.int32)
    token_type_ids = jnp.zeros((B, S), jnp.int32)
    attention_mask = jnp.ones((B, S), jnp.int32)

    fwd = jax.jit(lambda p, ii, tt, am: bert_for_glue_forward(p, cfg, ii, tt, am))
    logits, _ = fwd(params, input_ids, token_type_ids, attention_mask)
    jax.block_until_ready(logits)
    assert logits.shape == (B, num_labels)
    print("KERNEL_OK")
</pallas_src>

<mosaic_0001>
module attributes {stable_mosaic.version = 11 : i64} {
  func.func @_ln_kernel(%arg0: i32, %arg1: memref<16x128xbf16, #tpu.memory_space<vmem>>, %arg2: memref<1x128xf32, #tpu.memory_space<vmem>>, %arg3: memref<1x128xf32, #tpu.memory_space<vmem>>, %arg4: memref<16x128xbf16, #tpu.memory_space<vmem>>) attributes {dimension_semantics = [#tpu.dimension_semantics<parallel>], iteration_bounds = array<i64: 1>, scalar_prefetch = 0 : i64, scratch_operands = 0 : i64, tpu.core_type = #tpu.core_type<tc>, window_params = [{transform_indices = @transform_0, window_bounds = array<i64: 16, 128>}, {pipeline_mode = #tpu.pipeline_mode<synchronous>, transform_indices = @transform_1, window_bounds = array<i64: 1, 128>}, {pipeline_mode = #tpu.pipeline_mode<synchronous>, transform_indices = @transform_2, window_bounds = array<i64: 1, 128>}, {transform_indices = @transform_3, window_bounds = array<i64: 16, 128>}]} {
    %c0 = arith.constant 0 : index
    %c0_0 = arith.constant 0 : index
    %0 = vector.load %arg1[%c0, %c0_0] : memref<16x128xbf16, #tpu.memory_space<vmem>>, vector<16x128xbf16>
    %1 = arith.extf %0 : vector<16x128xbf16> to vector<16x128xf32>
    %c0_1 = arith.constant 0 : index
    %c0_2 = arith.constant 0 : index
    %2 = vector.load %arg2[%c0_1, %c0_2] : memref<1x128xf32, #tpu.memory_space<vmem>>, vector<1x128xf32>
    %c0_3 = arith.constant 0 : index
    %c0_4 = arith.constant 0 : index
    %3 = vector.load %arg3[%c0_3, %c0_4] : memref<1x128xf32, #tpu.memory_space<vmem>>, vector<1x128xf32>
    %cst = arith.constant dense<0.000000e+00> : vector<16xf32>
    %4 = vector.multi_reduction <add>, %1, %cst [1] : vector<16x128xf32> to vector<16xf32>
    %5 = vector.shape_cast %4 : vector<16xf32> to vector<16x1xf32>
    %cst_5 = arith.constant 1.280000e+02 : f32
    %6 = vector.broadcast %cst_5 : f32 to vector<16x1xf32>
    %7 = arith.divf %5, %6 : vector<16x1xf32>
    %8 = vector.broadcast %7 : vector<16x1xf32> to vector<16x128xf32>
    %9 = arith.subf %1, %8 : vector<16x128xf32>
    %10 = arith.mulf %9, %9 : vector<16x128xf32>
    %cst_6 = arith.constant dense<0.000000e+00> : vector<16xf32>
    %11 = vector.multi_reduction <add>, %10, %cst_6 [1] : vector<16x128xf32> to vector<16xf32>
    %12 = vector.shape_cast %11 : vector<16xf32> to vector<16x1xf32>
    %cst_7 = arith.constant 1.280000e+02 : f32
    %13 = vector.broadcast %cst_7 : f32 to vector<16x1xf32>
    %14 = arith.divf %12, %13 : vector<16x1xf32>
    %cst_8 = arith.constant 9.99999996E-13 : f32
    %15 = vector.broadcast %cst_8 : f32 to vector<16x1xf32>
    %16 = arith.addf %14, %15 : vector<16x1xf32>
    %17 = math.rsqrt %16 : vector<16x1xf32>
    %18 = vector.broadcast %17 : vector<16x1xf32> to vector<16x128xf32>
    %19 = arith.mulf %9, %18 : vector<16x128xf32>
    %20 = vector.broadcast %2 : vector<1x128xf32> to vector<16x128xf32>
    %21 = arith.mulf %19, %20 : vector<16x128xf32>
    %22 = vector.broadcast %3 : vector<1x128xf32> to vector<16x128xf32>
    %23 = arith.addf %21, %22 : vector<16x128xf32>
    %24 = arith.truncf %23 : vector<16x128xf32> to vector<16x128xbf16>
    %c0_9 = arith.constant 0 : index
    %c0_10 = arith.constant 0 : index
    %25 = vector.load %arg4[%c0_9, %c0_10] : memref<16x128xbf16, #tpu.memory_space<vmem>>, vector<16x128xbf16>
    tpu.vector_store %arg4[%c0_9, %c0_10], %24 {strides = array<i32>} : memref<16x128xbf16, #tpu.memory_space<vmem>>, vector<16x128xbf16>,
    return
  }
  func.func @transform_0(%arg0: i32) -> (i32, i32) {
    %c0_i32 = arith.constant 0 : i32
    %c0_i32_0 = arith.constant 0 : i32
    return %arg0, %c0_i32 : i32, i32
  }
  func.func @transform_1(%arg0: i32) -> (i32, i32) {
    %c0_i32 = arith.constant 0 : i32
    %c0_i32_0 = arith.constant 0 : i32
    %c0_i32_1 = arith.constant 0 : i32
    return %c0_i32, %c0_i32_0 : i32, i32
  }
  func.func @transform_2(%arg0: i32) -> (i32, i32) {
    %c0_i32 = arith.constant 0 : i32
    %c0_i32_0 = arith.constant 0 : i32
    %c0_i32_1 = arith.constant 0 : i32
    return %c0_i32, %c0_i32_0 : i32, i32
  }
  func.func @transform_3(%arg0: i32) -> (i32, i32) {
    %c0_i32 = arith.constant 0 : i32
    %c0_i32_0 = arith.constant 0 : i32
    return %arg0, %c0_i32 : i32, i32
  }
}

module attributes {stable_mosaic.version = 11 : i64} {
  func.func @_dense_single_kernel(%arg0: i32, %arg1: i32, %arg2: memref<16x128xbf16, #tpu.memory_space<vmem>>, %arg3: memref<128x384xbf16, #tpu.memory_space<vmem>>, %arg4: memref<1x384xf32, #tpu.memory_space<vmem>>, %arg5: memref<16x384xbf16, #tpu.memory_space<vmem>>) attributes {dimension_semantics = [#tpu.dimension_semantics<parallel>, #tpu.dimension_semantics<parallel>], iteration_bounds = array<i64: 1, 1>, scalar_prefetch = 0 : i64, scratch_operands = 0 : i64, tpu.core_type = #tpu.core_type<tc>, window_params = [{transform_indices = @transform_0, window_bounds = array<i64: 16, 128>}, {transform_indices = @transform_1, window_bounds = array<i64: 128, 384>}, {transform_indices = @transform_2, window_bounds = array<i64: 1, 384>}, {transform_indices = @transform_3, window_bounds = array<i64: 16, 384>}]} {
    %c0 = arith.constant 0 : index
    %c0_0 = arith.constant 0 : index
    %0 = vector.load %arg2[%c0, %c0_0] : memref<16x128xbf16, #tpu.memory_space<vmem>>, vector<16x128xbf16>
    %c0_1 = arith.constant 0 : index
    %c0_2 = arith.constant 0 : index
    %1 = vector.load %arg3[%c0_1, %c0_2] : memref<128x384xbf16, #tpu.memory_space<vmem>>, vector<128x384xbf16>
    %cst = arith.constant dense<0.000000e+00> : vector<16x384xf32>
    %2 = tpu.matmul %0, %1, %cst {dimension_numbers = #tpu.dot_dimension_numbers<[1], [0], [0], [1], [0, 0, 1, 1], [], []>} : vector<16x128xbf16>, vector<128x384xbf16>, vector<16x384xf32> -> vector<16x384xf32>
    %c0_3 = arith.constant 0 : index
    %c0_4 = arith.constant 0 : index
    %3 = vector.load %arg4[%c0_3, %c0_4] : memref<1x384xf32, #tpu.memory_space<vmem>>, vector<1x384xf32>
    %4 = vector.broadcast %3 : vector<1x384xf32> to vector<16x384xf32>
    %5 = arith.addf %2, %4 : vector<16x384xf32>
    %6 = arith.truncf %5 : vector<16x384xf32> to vector<16x384xbf16>
    %c0_5 = arith.constant 0 : index
    %c0_6 = arith.constant 0 : index
    %7 = vector.load %arg5[%c0_5, %c0_6] : memref<16x384xbf16, #tpu.memory_space<vmem>>, vector<16x384xbf16>
    tpu.vector_store %arg5[%c0_5, %c0_6], %6 {strides = array<i32>} : memref<16x384xbf16, #tpu.memory_space<vmem>>, vector<16x384xbf16>,
    return
  }
  func.func @transform_0(%arg0: i32, %arg1: i32) -> (i32, i32) {
    %c0_i32 = arith.constant 0 : i32
    %c0_i32_0 = arith.constant 0 : i32
    return %arg0, %c0_i32 : i32, i32
  }
  func.func @transform_1(%arg0: i32, %arg1: i32) -> (i32, i32) {
    %c0_i32 = arith.constant 0 : i32
    %c0_i32_0 = arith.constant 0 : i32
    return %c0_i32, %arg1 : i32, i32
  }
  func.func @transform_2(%arg0: i32, %arg1: i32) -> (i32, i32) {
    %c0_i32 = arith.constant 0 : i32
    %c0_i32_0 = arith.constant 0 : i32
    return %c0_i32, %arg1 : i32, i32
  }
  func.func @transform_3(%arg0: i32, %arg1: i32) -> (i32, i32) {
    %c0_i32 = arith.constant 0 : i32
    return %arg0, %arg1 : i32, i32
  }
}

module attributes {stable_mosaic.version = 11 : i64} {
  func.func @_dense_res_ln_single_kernel(%arg0: i32, %arg1: memref<16x128xbf16, #tpu.memory_space<vmem>>, %arg2: memref<128x128xbf16, #tpu.memory_space<vmem>>, %arg3: memref<1x128xf32, #tpu.memory_space<vmem>>, %arg4: memref<16x128xbf16, #tpu.memory_space<vmem>>, %arg5: memref<1x128xf32, #tpu.memory_space<vmem>>, %arg6: memref<1x128xf32, #tpu.memory_space<vmem>>, %arg7: memref<16x128xbf16, #tpu.memory_space<vmem>>) attributes {dimension_semantics = [#tpu.dimension_semantics<parallel>], iteration_bounds = array<i64: 1>, scalar_prefetch = 0 : i64, scratch_operands = 0 : i64, tpu.core_type = #tpu.core_type<tc>, window_params = [{transform_indices = @transform_0, window_bounds = array<i64: 16, 128>}, {pipeline_mode = #tpu.pipeline_mode<synchronous>, transform_indices = @transform_1, window_bounds = array<i64: 128, 128>}, {pipeline_mode = #tpu.pipeline_mode<synchronous>, transform_indices = @transform_2, window_bounds = array<i64: 1, 128>}, {transform_indices = @transform_3, window_bounds = array<i64: 16, 128>}, {pipeline_mode = #tpu.pipeline_mode<synchronous>, transform_indices = @transform_4, window_bounds = array<i64: 1, 128>}, {pipeline_mode = #tpu.pipeline_mode<synchronous>, transform_indices = @transform_5, window_bounds = array<i64: 1, 128>}, {transform_indices = @transform_6, window_bounds = array<i64: 16, 128>}]} {
    %c0 = arith.constant 0 : index
    %c0_0 = arith.constant 0 : index
    %0 = vector.load %arg1[%c0, %c0_0] : memref<16x128xbf16, #tpu.memory_space<vmem>>, vector<16x128xbf16>
    %c0_1 = arith.constant 0 : index
    %c0_2 = arith.constant 0 : index
    %1 = vector.load %arg2[%c0_1, %c0_2] : memref<128x128xbf16, #tpu.memory_space<vmem>>, vector<128x128xbf16>
    %cst = arith.constant dense<0.000000e+00> : vector<16x128xf32>
    %2 = tpu.matmul %0, %1, %cst {dimension_numbers = #tpu.dot_dimension_numbers<[1], [0], [0], [1], [0, 0, 1, 1], [], []>} : vector<16x128xbf16>, vector<128x128xbf16>, vector<16x128xf32> -> vector<16x128xf32>
    %c0_3 = arith.constant 0 : index
    %c0_4 = arith.constant 0 : index
    %3 = vector.load %arg3[%c0_3, %c0_4] : memref<1x128xf32, #tpu.memory_space<vmem>>, vector<1x128xf32>
    %4 = vector.broadcast %3 : vector<1x128xf32> to vector<16x128xf32>
    %5 = arith.addf %2, %4 : vector<16x128xf32>
    %c0_5 = arith.constant 0 : index
    %c0_6 = arith.constant 0 : index
    %6 = vector.load %arg4[%c0_5, %c0_6] : memref<16x128xbf16, #tpu.memory_space<vmem>>, vector<16x128xbf16>
    %7 = arith.extf %6 : vector<16x128xbf16> to vector<16x128xf32>
    %8 = arith.addf %5, %7 : vector<16x128xf32>
    %c0_7 = arith.constant 0 : index
    %c0_8 = arith.constant 0 : index
    %9 = vector.load %arg5[%c0_7, %c0_8] : memref<1x128xf32, #tpu.memory_space<vmem>>, vector<1x128xf32>
    %c0_9 = arith.constant 0 : index
    %c0_10 = arith.constant 0 : index
    %10 = vector.load %arg6[%c0_9, %c0_10] : memref<1x128xf32, #tpu.memory_space<vmem>>, vector<1x128xf32>
    %cst_11 = arith.constant dense<0.000000e+00> : vector<16xf32>
    %11 = vector.multi_reduction <add>, %8, %cst_11 [1] : vector<16x128xf32> to vector<16xf32>
    %12 = vector.shape_cast %11 : vector<16xf32> to vector<16x1xf32>
    %cst_12 = arith.constant 1.280000e+02 : f32
    %13 = vector.broadcast %cst_12 : f32 to vector<16x1xf32>
    %14 = arith.divf %12, %13 : vector<16x1xf32>
    %15 = vector.broadcast %14 : vector<16x1xf32> to vector<16x128xf32>
    %16 = arith.subf %8, %15 : vector<16x128xf32>
    %17 = arith.mulf %16, %16 : vector<16x128xf32>
    %cst_13 = arith.constant dense<0.000000e+00> : vector<16xf32>
    %18 = vector.multi_reduction <add>, %17, %cst_13 [1] : vector<16x128xf32> to vector<16xf32>
    %19 = vector.shape_cast %18 : vector<16xf32> to vector<16x1xf32>
    %cst_14 = arith.constant 1.280000e+02 : f32
    %20 = vector.broadcast %cst_14 : f32 to vector<16x1xf32>
    %21 = arith.divf %19, %20 : vector<16x1xf32>
    %cst_15 = arith.constant 9.99999996E-13 : f32
    %22 = vector.broadcast %cst_15 : f32 to vector<16x1xf32>
    %23 = arith.addf %21, %22 : vector<16x1xf32>
    %24 = math.rsqrt %23 : vector<16x1xf32>
    %25 = vector.broadcast %24 : vector<16x1xf32> to vector<16x128xf32>
    %26 = arith.mulf %16, %25 : vector<16x128xf32>
    %27 = vector.broadcast %9 : vector<1x128xf32> to vector<16x128xf32>
    %28 = arith.mulf %26, %27 : vector<16x128xf32>
    %29 = vector.broadcast %10 : vector<1x128xf32> to vector<16x128xf32>
    %30 = arith.addf %28, %29 : vector<16x128xf32>
    %31 = arith.truncf %30 : vector<16x128xf32> to vector<16x128xbf16>
    %c0_16 = arith.constant 0 : index
    %c0_17 = arith.constant 0 : index
    %32 = vector.load %arg7[%c0_16, %c0_17] : memref<16x128xbf16, #tpu.memory_space<vmem>>, vector<16x128xbf16>
    tpu.vector_store %arg7[%c0_16, %c0_17], %31 {strides = array<i32>} : memref<16x128xbf16, #tpu.memory_space<vmem>>, vector<16x128xbf16>,
    return
  }
  func.func @transform_0(%arg0: i32) -> (i32, i32) {
    %c0_i32 = arith.constant 0 : i32
    %c0_i32_0 = arith.constant 0 : i32
    return %arg0, %c0_i32 : i32, i32
  }
  func.func @transform_1(%arg0: i32) -> (i32, i32) {
    %c0_i32 = arith.constant 0 : i32
    %c0_i32_0 = arith.constant 0 : i32
    %c0_i32_1 = arith.constant 0 : i32
    return %c0_i32, %c0_i32_0 : i32, i32
  }
  func.func @transform_2(%arg0: i32) -> (i32, i32) {
    %c0_i32 = arith.constant 0 : i32
    %c0_i32_0 = arith.constant 0 : i32
    %c0_i32_1 = arith.constant 0 : i32
    return %c0_i32, %c0_i32_0 : i32, i32
  }
  func.func @transform_3(%arg0: i32) -> (i32, i32) {
    %c0_i32 = arith.constant 0 : i32
    %c0_i32_0 = arith.constant 0 : i32
    return %arg0, %c0_i32 : i32, i32
  }
  func.func @transform_4(%arg0: i32) -> (i32, i32) {
    %c0_i32 = arith.constant 0 : i32
    %c0_i32_0 = arith.constant 0 : i32
    %c0_i32_1 = arith.constant 0 : i32
    return %c0_i32, %c0_i32_0 : i32, i32
  }
  func.func @transform_5(%arg0: i32) -> (i32, i32) {
    %c0_i32 = arith.constant 0 : i32
    %c0_i32_0 = arith.constant 0 : i32
    %c0_i32_1 = arith.constant 0 : i32
    return %c0_i32, %c0_i32_0 : i32, i32
  }
  func.func @transform_6(%arg0: i32) -> (i32, i32) {
    %c0_i32 = arith.constant 0 : i32
    %c0_i32_0 = arith.constant 0 : i32
    return %arg0, %c0_i32 : i32, i32
  }
}

module attributes {stable_mosaic.version = 11 : i64} {
  func.func @_attention_kernel(%arg0: i32, %arg1: i32, %arg2: i32, %arg3: memref<1x8x128xbf16, #tpu.memory_space<vmem>>, %arg4: memref<1x8x128xbf16, #tpu.memory_space<vmem>>, %arg5: memref<1x8x128xbf16, #tpu.memory_space<vmem>>, %arg6: memref<1x1x8xf32, #tpu.memory_space<vmem>>, %arg7: memref<1x8x128xbf16, #tpu.memory_space<vmem>>, %arg8: memref<8x128xf32, #tpu.memory_space<vmem>>, %arg9: memref<2x8x1xf32, #tpu.memory_space<vmem>>, %arg10: memref<2x8x1xf32, #tpu.memory_space<vmem>>) attributes {dimension_semantics = [#tpu.dimension_semantics<parallel>, #tpu.dimension_semantics<parallel>, #tpu.dimension_semantics<arbitrary>], iteration_bounds = array<i64: 2, 1, 1>, scalar_prefetch = 0 : i64, scratch_operands = 3 : i64, tpu.core_type = #tpu.core_type<tc>, window_params = [{transform_indices = @transform_0, window_bounds = array<i64: 1, 8, 128>}, {transform_indices = @transform_1, window_bounds = array<i64: 1, 8, 128>}, {transform_indices = @transform_2, window_bounds = array<i64: 1, 8, 128>}, {transform_indices = @transform_3, window_bounds = array<i64: 1, 1, 8>}, {transform_indices = @transform_4, window_bounds = array<i64: 1, 8, 128>}]} {
    %c0_i32 = arith.constant 0 : i32
    %0 = arith.cmpi eq, %arg2, %c0_i32 : i32
    %1 = arith.extui %0 : i1 to i32
    %c0_i32_0 = arith.constant 0 : i32
    %2 = arith.cmpi ne, %1, %c0_i32_0 : i32
    scf.if %2 {
      %cst_62 = arith.constant 0.000000e+00 : f32
      %90 = vector.broadcast %cst_62 : f32 to vector<8x128xf32>
      %c0_63 = arith.constant 0 : index
      %c0_64 = arith.constant 0 : index
      %91 = vector.load %arg8[%c0_63, %c0_64] : memref<8x128xf32, #tpu.memory_space<vmem>>, vector<8x128xf32>
      tpu.vector_store %arg8[%c0_63, %c0_64], %90 {strides = array<i32>} : memref<8x128xf32, #tpu.memory_space<vmem>>, vector<8x128xf32>,
      %cst_65 = arith.constant -1.000000e+30 : f32
      %92 = vector.broadcast %cst_65 : f32 to vector<2x8x1xf32>
      %c0_66 = arith.constant 0 : index
      %c0_67 = arith.constant 0 : index
      %c0_68 = arith.constant 0 : index
      %93 = vector.load %arg9[%c0_66, %c0_67, %c0_68] : memref<2x8x1xf32, #tpu.memory_space<vmem>>, vector<2x8x1xf32>
      tpu.vector_store %arg9[%c0_66, %c0_67, %c0_68], %92 {strides = array<i32>} : memref<2x8x1xf32, #tpu.memory_space<vmem>>, vector<2x8x1xf32>,
      %cst_69 = arith.constant 0.000000e+00 : f32
      %94 = vector.broadcast %cst_69 : f32 to vector<2x8x1xf32>
      %c0_70 = arith.constant 0 : index
      %c0_71 = arith.constant 0 : index
      %c0_72 = arith.constant 0 : index
      %95 = vector.load %arg10[%c0_70, %c0_71, %c0_72] : memref<2x8x1xf32, #tpu.memory_space<vmem>>, vector<2x8x1xf32>
      tpu.vector_store %arg10[%c0_70, %c0_71, %c0_72], %94 {strides = array<i32>} : memref<2x8x1xf32, #tpu.memory_space<vmem>>, vector<2x8x1xf32>,
    } else {
    }
    %c0 = arith.constant 0 : index
    %c0_1 = arith.constant 0 : index
    %c0_2 = arith.constant 0 : index
    %3 = vector.load %arg6[%c0, %c0_1, %c0_2] : memref<1x1x8xf32, #tpu.memory_space<vmem>>, vector<1x1x8xf32>
    %4 = vector.shape_cast %3 : vector<1x1x8xf32> to vector<1x8xf32>
    %c0_3 = arith.constant 0 : index
    %c0_4 = arith.constant 0 : index
    %c0_5 = arith.constant 0 : index
    %5 = vector.load %arg3[%c0_3, %c0_4, %c0_5] : memref<1x8x128xbf16, #tpu.memory_space<vmem>>, vector<1x8x64xbf16>
    %6 = vector.shape_cast %5 : vector<1x8x64xbf16> to vector<8x64xbf16>
    %c0_6 = arith.constant 0 : index
    %c0_7 = arith.constant 0 : index
    %c0_8 = arith.constant 0 : index
    %7 = vector.load %arg4[%c0_6, %c0_7, %c0_8] : memref<1x8x128xbf16, #tpu.memory_space<vmem>>, vector<1x8x64xbf16>
    %8 = vector.shape_cast %7 : vector<1x8x64xbf16> to vector<8x64xbf16>
    %c0_9 = arith.constant 0 : index
    %c0_10 = arith.constant 0 : index
    %c0_11 = arith.constant 0 : index
    %9 = vector.load %arg5[%c0_9, %c0_10, %c0_11] : memref<1x8x128xbf16, #tpu.memory_space<vmem>>, vector<1x8x64xbf16>
    %10 = vector.shape_cast %9 : vector<1x8x64xbf16> to vector<8x64xbf16>
    %11 = tpu.transpose %8, [1, 0] : vector<8x64xbf16> -> vector<64x8xbf16>
    %cst = arith.constant dense<0.000000e+00> : vector<8x8xf32>
    %12 = tpu.matmul %6, %11, %cst {dimension_numbers = #tpu.dot_dimension_numbers<[1], [0], [0], [1], [0, 0, 1, 1], [], []>} : vector<8x64xbf16>, vector<64x8xbf16>, vector<8x8xf32> -> vector<8x8xf32>
    %cst_12 = arith.constant 1.250000e-01 : f32
    %13 = vector.broadcast %cst_12 : f32 to vector<8x8xf32>
    %14 = arith.mulf %12, %13 : vector<8x8xf32>
    %15 = vector.broadcast %4 : vector<1x8xf32> to vector<8x8xf32>
    %16 = arith.addf %14, %15 : vector<8x8xf32>
    %c0_13 = arith.constant 0 : index
    %c0_14 = arith.constant 0 : index
    %c0_15 = arith.constant 0 : index
    %17 = vector.load %arg9[%c0_13, %c0_14, %c0_15] : memref<2x8x1xf32, #tpu.memory_space<vmem>>, vector<1x8x1xf32>
    %18 = vector.shape_cast %17 : vector<1x8x1xf32> to vector<8x1xf32>
    %c0_16 = arith.constant 0 : index
    %c0_17 = arith.constant 0 : index
    %c0_18 = arith.constant 0 : index
    %19 = vector.load %arg10[%c0_16, %c0_17, %c0_18] : memref<2x8x1xf32, #tpu.memory_space<vmem>>, vector<1x8x1xf32>
    %20 = vector.shape_cast %19 : vector<1x8x1xf32> to vector<8x1xf32>
    %cst_19 = arith.constant dense<0xFF800000> : vector<8xf32>
    %21 = vector.multi_reduction <maximumf>, %16, %cst_19 [1] : vector<8x8xf32> to vector<8xf32>
    %22 = vector.shape_cast %21 : vector<8xf32> to vector<8x1xf32>
    %23 = arith.maximumf %18, %22 : vector<8x1xf32>
    %24 = arith.subf %18, %23 : vector<8x1xf32>
    %25 = math.exp %24 : vector<8x1xf32>
    %26 = vector.broadcast %23 : vector<8x1xf32> to vector<8x8xf32>
    %27 = arith.subf %16, %26 : vector<8x8xf32>
    %28 = math.exp %27 : vector<8x8xf32>
    %29 = arith.mulf %25, %20 : vector<8x1xf32>
    %cst_20 = arith.constant dense<0.000000e+00> : vector<8xf32>
    %30 = vector.multi_reduction <add>, %28, %cst_20 [1] : vector<8x8xf32> to vector<8xf32>
    %31 = vector.shape_cast %30 : vector<8xf32> to vector<8x1xf32>
    %32 = arith.addf %29, %31 : vector<8x1xf32>
    %c0_21 = arith.constant 0 : index
    %c0_22 = arith.constant 0 : index
    %c0_23 = arith.constant 0 : index
    %33 = vector.load %arg10[%c0_21, %c0_22, %c0_23] : memref<2x8x1xf32, #tpu.memory_space<vmem>>, vector<1x8x1xf32>
    %34 = vector.shape_cast %33 : vector<1x8x1xf32> to vector<8x1xf32>
    %35 = vector.shape_cast %32 : vector<8x1xf32> to vector<1x8x1xf32>
    tpu.vector_store %arg10[%c0_21, %c0_22, %c0_23], %35 {strides = array<i32>} : memref<2x8x1xf32, #tpu.memory_space<vmem>>, vector<1x8x1xf32>,
    %c0_24 = arith.constant 0 : index
    %c0_25 = arith.constant 0 : index
    %c0_26 = arith.constant 0 : index
    %36 = vector.load %arg9[%c0_24, %c0_25, %c0_26] : memref<2x8x1xf32, #tpu.memory_space<vmem>>, vector<1x8x1xf32>
    %37 = vector.shape_cast %36 : vector<1x8x1xf32> to vector<8x1xf32>
    %38 = vector.shape_cast %23 : vector<8x1xf32> to vector<1x8x1xf32>
    tpu.vector_store %arg9[%c0_24, %c0_25, %c0_26], %38 {strides = array<i32>} : memref<2x8x1xf32, #tpu.memory_space<vmem>>, vector<1x8x1xf32>,
    %39 = arith.truncf %28 : vector<8x8xf32> to vector<8x8xbf16>
    %cst_27 = arith.constant dense<0.000000e+00> : vector<8x64xf32>
    %40 = tpu.matmul %39, %10, %cst_27 {dimension_numbers = #tpu.dot_dimension_numbers<[1], [0], [0], [1], [0, 0, 1, 1], [], []>} : vector<8x8xbf16>, vector<8x64xbf16>, vector<8x64xf32> -> vector<8x64xf32>
    %c0_28 = arith.constant 0 : index
    %c0_29 = arith.constant 0 : index
    %41 = vector.load %arg8[%c0_28, %c0_29] : memref<8x128xf32, #tpu.memory_space<vmem>>, vector<8x64xf32>
    %42 = vector.broadcast %25 : vector<8x1xf32> to vector<8x64xf32>
    %43 = arith.mulf %42, %41 : vector<8x64xf32>
    %44 = arith.addf %43, %40 : vector<8x64xf32>
    %c0_30 = arith.constant 0 : index
    %c0_31 = arith.constant 0 : index
    %45 = vector.load %arg8[%c0_30, %c0_31] : memref<8x128xf32, #tpu.memory_space<vmem>>, vector<8x64xf32>
    tpu.vector_store %arg8[%c0_30, %c0_31], %44 {strides = array<i32>} : memref<8x128xf32, #tpu.memory_space<vmem>>, vector<8x64xf32>,
    %c0_32 = arith.constant 0 : index
    %c0_33 = arith.constant 0 : index
    %c64 = arith.constant 64 : index
    %46 = vector.load %arg3[%c0_32, %c0_33, %c64] : memref<1x8x128xbf16, #tpu.memory_space<vmem>>, vector<1x8x64xbf16>
    %47 = vector.shape_cast %46 : vector<1x8x64xbf16> to vector<8x64xbf16>
    %c0_34 = arith.constant 0 : index
    %c0_35 = arith.constant 0 : index
    %c64_36 = arith.constant 64 : index
    %48 = vector.load %arg4[%c0_34, %c0_35, %c64_36] : memref<1x8x128xbf16, #tpu.memory_space<vmem>>, vector<1x8x64xbf16>
    %49 = vector.shape_cast %48 : vector<1x8x64xbf16> to vector<8x64xbf16>
    %c0_37 = arith.constant 0 : index
    %c0_38 = arith.constant 0 : index
    %c64_39 = arith.constant 64 : index
    %50 = vector.load %arg5[%c0_37, %c0_38, %c64_39] : memref<1x8x128xbf16, #tpu.memory_space<vmem>>, vector<1x8x64xbf16>
    %51 = vector.shape_cast %50 : vector<1x8x64xbf16> to vector<8x64xbf16>
    %52 = tpu.transpose %49, [1, 0] : vector<8x64xbf16> -> vector<64x8xbf16>
    %cst_40 = arith.constant dense<0.000000e+00> : vector<8x8xf32>
    %53 = tpu.matmul %47, %52, %cst_40 {dimension_numbers = #tpu.dot_dimension_numbers<[1], [0], [0], [1], [0, 0, 1, 1], [], []>} : vector<8x64xbf16>, vector<64x8xbf16>, vector<8x8xf32> -> vector<8x8xf32>
    %cst_41 = arith.constant 1.250000e-01 : f32
    %54 = vector.broadcast %cst_41 : f32 to vector<8x8xf32>
    %55 = arith.mulf %53, %54 : vector<8x8xf32>
    %56 = vector.broadcast %4 : vector<1x8xf32> to vector<8x8xf32>
    %57 = arith.addf %55, %56 : vector<8x8xf32>
    %c1 = arith.constant 1 : index
    %c0_42 = arith.constant 0 : index
    %c0_43 = arith.constant 0 : index
    %58 = vector.load %arg9[%c1, %c0_42, %c0_43] : memref<2x8x1xf32, #tpu.memory_space<vmem>>, vector<1x8x1xf32>
    %59 = vector.shape_cast %58 : vector<1x8x1xf32> to vector<8x1xf32>
    %c1_44 = arith.constant 1 : index
    %c0_45 = arith.constant 0 : index
    %c0_46 = arith.constant 0 : index
    %60 = vector.load %arg10[%c1_44, %c0_45, %c0_46] : memref<2x8x1xf32, #tpu.memory_space<vmem>>, vector<1x8x1xf32>
    %61 = vector.shape_cast %60 : vector<1x8x1xf32> to vector<8x1xf32>
    %cst_47 = arith.constant dense<0xFF800000> : vector<8xf32>
    %62 = vector.multi_reduction <maximumf>, %57, %cst_47 [1] : vector<8x8xf32> to vector<8xf32>
    %63 = vector.shape_cast %62 : vector<8xf32> to vector<8x1xf32>
    %64 = arith.maximumf %59, %63 : vector<8x1xf32>
    %65 = arith.subf %59, %64 : vector<8x1xf32>
    %66 = math.exp %65 : vector<8x1xf32>
    %67 = vector.broadcast %64 : vector<8x1xf32> to vector<8x8xf32>
    %68 = arith.subf %57, %67 : vector<8x8xf32>
    %69 = math.exp %68 : vector<8x8xf32>
    %70 = arith.mulf %66, %61 : vector<8x1xf32>
    %cst_48 = arith.constant dense<0.000000e+00> : vector<8xf32>
    %71 = vector.multi_reduction <add>, %69, %cst_48 [1] : vector<8x8xf32> to vector<8xf32>
    %72 = vector.shape_cast %71 : vector<8xf32> to vector<8x1xf32>
    %73 = arith.addf %70, %72 : vector<8x1xf32>
    %c1_49 = arith.constant 1 : index
    %c0_50 = arith.constant 0 : index
    %c0_51 = arith.constant 0 : index
    %74 = vector.load %arg10[%c1_49, %c0_50, %c0_51] : memref<2x8x1xf32, #tpu.memory_space<vmem>>, vector<1x8x1xf32>
    %75 = vector.shape_cast %74 : vector<1x8x1xf32> to vector<8x1xf32>
    %76 = vector.shape_cast %73 : vector<8x1xf32> to vector<1x8x1xf32>
    tpu.vector_store %arg10[%c1_49, %c0_50, %c0_51], %76 {strides = array<i32>} : memref<2x8x1xf32, #tpu.memory_space<vmem>>, vector<1x8x1xf32>,
    %c1_52 = arith.constant 1 : index
    %c0_53 = arith.constant 0 : index
    %c0_54 = arith.constant 0 : index
    %77 = vector.load %arg9[%c1_52, %c0_53, %c0_54] : memref<2x8x1xf32, #tpu.memory_space<vmem>>, vector<1x8x1xf32>
    %78 = vector.shape_cast %77 : vector<1x8x1xf32> to vector<8x1xf32>
    %79 = vector.shape_cast %64 : vector<8x1xf32> to vector<1x8x1xf32>
    tpu.vector_store %arg9[%c1_52, %c0_53, %c0_54], %79 {strides = array<i32>} : memref<2x8x1xf32, #tpu.memory_space<vmem>>, vector<1x8x1xf32>,
    %80 = arith.truncf %69 : vector<8x8xf32> to vector<8x8xbf16>
    %cst_55 = arith.constant dense<0.000000e+00> : vector<8x64xf32>
    %81 = tpu.matmul %80, %51, %cst_55 {dimension_numbers = #tpu.dot_dimension_numbers<[1], [0], [0], [1], [0, 0, 1, 1], [], []>} : vector<8x8xbf16>, vector<8x64xbf16>, vector<8x64xf32> -> vector<8x64xf32>
    %c0_56 = arith.constant 0 : index
    %c64_57 = arith.constant 64 : index
    %82 = vector.load %arg8[%c0_56, %c64_57] : memref<8x128xf32, #tpu.memory_space<vmem>>, vector<8x64xf32>
    %83 = vector.broadcast %66 : vector<8x1xf32> to vector<8x64xf32>
    %84 = arith.mulf %83, %82 : vector<8x64xf32>
    %85 = arith.addf %84, %81 : vector<8x64xf32>
    %c0_58 = arith.constant 0 : index
    %c64_59 = arith.constant 64 : index
    %86 = vector.load %arg8[%c0_58, %c64_59] : memref<8x128xf32, #tpu.memory_space<vmem>>, vector<8x64xf32>
    tpu.vector_store %arg8[%c0_58, %c64_59], %85 {strides = array<i32>} : memref<8x128xf32, #tpu.memory_space<vmem>>, vector<8x64xf32>,
    %c0_i32_60 = arith.constant 0 : i32
    %87 = arith.cmpi eq, %arg2, %c0_i32_60 : i32
    %88 = arith.extui %87 : i1 to i32
    %c0_i32_61 = arith.constant 0 : i32
    %89 = arith.cmpi ne, %88, %c0_i32_61 : i32
    scf.if %89 {
      %c0_62 = arith.constant 0 : index
      %c0_63 = arith.constant 0 : index
      %90 = vector.load %arg8[%c0_62, %c0_63] : memref<8x128xf32, #tpu.memory_space<vmem>>, vector<8x64xf32>
      %c0_64 = arith.constant 0 : index
      %c0_65 = arith.constant 0 : index
      %c0_66 = arith.constant 0 : index
      %91 = vector.load %arg10[%c0_64, %c0_65, %c0_66] : memref<2x8x1xf32, #tpu.memory_space<vmem>>, vector<1x8x1xf32>
      %92 = vector.shape_cast %91 : vector<1x8x1xf32> to vector<8x1xf32>
      %93 = vector.broadcast %92 : vector<8x1xf32> to vector<8x64xf32>
      %94 = arith.divf %90, %93 : vector<8x64xf32>
      %c0_67 = arith.constant 0 : index
      %c64_68 = arith.constant 64 : index
      %95 = vector.load %arg8[%c0_67, %c64_68] : memref<8x128xf32, #tpu.memory_space<vmem>>, vector<8x64xf32>
      %c1_69 = arith.constant 1 : index
      %c0_70 = arith.constant 0 : index
      %c0_71 = arith.constant 0 : index
      %96 = vector.load %arg10[%c1_69, %c0_70, %c0_71] : memref<2x8x1xf32, #tpu.memory_space<vmem>>, vector<1x8x1xf32>
      %97 = vector.shape_cast %96 : vector<1x8x1xf32> to vector<8x1xf32>
      %98 = vector.broadcast %97 : vector<8x1xf32> to vector<8x64xf32>
      %99 = arith.divf %95, %98 : vector<8x64xf32>
      %100 = tpu.concatenate %94, %99 in 1 : vector<8x64xf32>, vector<8x64xf32> -> vector<8x128xf32>
      %101 = arith.truncf %100 : vector<8x128xf32> to vector<8x128xbf16>
      %c0_72 = arith.constant 0 : index
      %c0_73 = arith.constant 0 : index
      %c0_74 = arith.constant 0 : index
      %102 = vector.load %arg7[%c0_72, %c0_73, %c0_74] : memref<1x8x128xbf16, #tpu.memory_space<vmem>>, vector<1x8x128xbf16>
      %103 = vector.shape_cast %102 : vector<1x8x128xbf16> to vector<8x128xbf16>
      %104 = vector.shape_cast %101 : vector<8x128xbf16> to vector<1x8x128xbf16>
      tpu.vector_store %arg7[%c0_72, %c0_73, %c0_74], %104 {strides = array<i32>} : memref<1x8x128xbf16, #tpu.memory_space<vmem>>, vector<1x8x128xbf16>,
    } else {
    }
    return
  }
  func.func @transform_0(%arg0: i32, %arg1: i32, %arg2: i32) -> (i32, i32, i32) {
    %c0_i32 = arith.constant 0 : i32
    %0 = arith.addi %c0_i32, %arg1 : i32
    %c0_i32_0 = arith.constant 0 : i32
    %c0_i32_1 = arith.constant 0 : i32
    return %arg0, %c0_i32_0, %0 : i32, i32, i32
  }
  func.func @transform_1(%arg0: i32, %arg1: i32, %arg2: i32) -> (i32, i32, i32) {
    %c1_i32 = arith.constant 1 : i32
    %0 = arith.addi %c1_i32, %arg1 : i32
    %c0_i32 = arith.constant 0 : i32
    return %arg0, %arg2, %0 : i32, i32, i32
  }
  func.func @transform_2(%arg0: i32, %arg1: i32, %arg2: i32) -> (i32, i32, i32) {
    %c2_i32 = arith.constant 2 : i32
    %0 = arith.addi %c2_i32, %arg1 : i32
    %c0_i32 = arith.constant 0 : i32
    return %arg0, %arg2, %0 : i32, i32, i32
  }
  func.func @transform_3(%arg0: i32, %arg1: i32, %arg2: i32) -> (i32, i32, i32) {
    %c0_i32 = arith.constant 0 : i32
    %c0_i32_0 = arith.constant 0 : i32
    return %arg0, %c0_i32, %arg2 : i32, i32, i32
  }
  func.func @transform_4(%arg0: i32, %arg1: i32, %arg2: i32) -> (i32, i32, i32) {
    %c0_i32 = arith.constant 0 : i32
    %c0_i32_0 = arith.constant 0 : i32
    return %arg0, %c0_i32, %arg1 : i32, i32, i32
  }
}

module attributes {stable_mosaic.version = 11 : i64} {
  func.func @_dense_res_ln_single_kernel(%arg0: i32, %arg1: memref<16x256xbf16, #tpu.memory_space<vmem>>, %arg2: memref<256x128xbf16, #tpu.memory_space<vmem>>, %arg3: memref<1x128xf32, #tpu.memory_space<vmem>>, %arg4: memref<16x128xbf16, #tpu.memory_space<vmem>>, %arg5: memref<1x128xf32, #tpu.memory_space<vmem>>, %arg6: memref<1x128xf32, #tpu.memory_space<vmem>>, %arg7: memref<16x128xbf16, #tpu.memory_space<vmem>>) attributes {dimension_semantics = [#tpu.dimension_semantics<parallel>], iteration_bounds = array<i64: 1>, scalar_prefetch = 0 : i64, scratch_operands = 0 : i64, tpu.core_type = #tpu.core_type<tc>, window_params = [{transform_indices = @transform_0, window_bounds = array<i64: 16, 256>}, {pipeline_mode = #tpu.pipeline_mode<synchronous>, transform_indices = @transform_1, window_bounds = array<i64: 256, 128>}, {pipeline_mode = #tpu.pipeline_mode<synchronous>, transform_indices = @transform_2, window_bounds = array<i64: 1, 128>}, {transform_indices = @transform_3, window_bounds = array<i64: 16, 128>}, {pipeline_mode = #tpu.pipeline_mode<synchronous>, transform_indices = @transform_4, window_bounds = array<i64: 1, 128>}, {pipeline_mode = #tpu.pipeline_mode<synchronous>, transform_indices = @transform_5, window_bounds = array<i64: 1, 128>}, {transform_indices = @transform_6, window_bounds = array<i64: 16, 128>}]} {
    %c0 = arith.constant 0 : index
    %c0_0 = arith.constant 0 : index
    %0 = vector.load %arg1[%c0, %c0_0] : memref<16x256xbf16, #tpu.memory_space<vmem>>, vector<16x256xbf16>
    %c0_1 = arith.constant 0 : index
    %c0_2 = arith.constant 0 : index
    %1 = vector.load %arg2[%c0_1, %c0_2] : memref<256x128xbf16, #tpu.memory_space<vmem>>, vector<256x128xbf16>
    %cst = arith.constant dense<0.000000e+00> : vector<16x128xf32>
    %2 = tpu.matmul %0, %1, %cst {dimension_numbers = #tpu.dot_dimension_numbers<[1], [0], [0], [1], [0, 0, 1, 1], [], []>} : vector<16x256xbf16>, vector<256x128xbf16>, vector<16x128xf32> -> vector<16x128xf32>
    %c0_3 = arith.constant 0 : index
    %c0_4 = arith.constant 0 : index
    %3 = vector.load %arg3[%c0_3, %c0_4] : memref<1x128xf32, #tpu.memory_space<vmem>>, vector<1x128xf32>
    %4 = vector.broadcast %3 : vector<1x128xf32> to vector<16x128xf32>
    %5 = arith.addf %2, %4 : vector<16x128xf32>
    %c0_5 = arith.constant 0 : index
    %c0_6 = arith.constant 0 : index
    %6 = vector.load %arg4[%c0_5, %c0_6] : memref<16x128xbf16, #tpu.memory_space<vmem>>, vector<16x128xbf16>
    %7 = arith.extf %6 : vector<16x128xbf16> to vector<16x128xf32>
    %8 = arith.addf %5, %7 : vector<16x128xf32>
    %c0_7 = arith.constant 0 : index
    %c0_8 = arith.constant 0 : index
    %9 = vector.load %arg5[%c0_7, %c0_8] : memref<1x128xf32, #tpu.memory_space<vmem>>, vector<1x128xf32>
    %c0_9 = arith.constant 0 : index
    %c0_10 = arith.constant 0 : index
    %10 = vector.load %arg6[%c0_9, %c0_10] : memref<1x128xf32, #tpu.memory_space<vmem>>, vector<1x128xf32>
    %cst_11 = arith.constant dense<0.000000e+00> : vector<16xf32>
    %11 = vector.multi_reduction <add>, %8, %cst_11 [1] : vector<16x128xf32> to vector<16xf32>
    %12 = vector.shape_cast %11 : vector<16xf32> to vector<16x1xf32>
    %cst_12 = arith.constant 1.280000e+02 : f32
    %13 = vector.broadcast %cst_12 : f32 to vector<16x1xf32>
    %14 = arith.divf %12, %13 : vector<16x1xf32>
    %15 = vector.broadcast %14 : vector<16x1xf32> to vector<16x128xf32>
    %16 = arith.subf %8, %15 : vector<16x128xf32>
    %17 = arith.mulf %16, %16 : vector<16x128xf32>
    %cst_13 = arith.constant dense<0.000000e+00> : vector<16xf32>
    %18 = vector.multi_reduction <add>, %17, %cst_13 [1] : vector<16x128xf32> to vector<16xf32>
    %19 = vector.shape_cast %18 : vector<16xf32> to vector<16x1xf32>
    %cst_14 = arith.constant 1.280000e+02 : f32
    %20 = vector.broadcast %cst_14 : f32 to vector<16x1xf32>
    %21 = arith.divf %19, %20 : vector<16x1xf32>
    %cst_15 = arith.constant 9.99999996E-13 : f32
    %22 = vector.broadcast %cst_15 : f32 to vector<16x1xf32>
    %23 = arith.addf %21, %22 : vector<16x1xf32>
    %24 = math.rsqrt %23 : vector<16x1xf32>
    %25 = vector.broadcast %24 : vector<16x1xf32> to vector<16x128xf32>
    %26 = arith.mulf %16, %25 : vector<16x128xf32>
    %27 = vector.broadcast %9 : vector<1x128xf32> to vector<16x128xf32>
    %28 = arith.mulf %26, %27 : vector<16x128xf32>
    %29 = vector.broadcast %10 : vector<1x128xf32> to vector<16x128xf32>
    %30 = arith.addf %28, %29 : vector<16x128xf32>
    %31 = arith.truncf %30 : vector<16x128xf32> to vector<16x128xbf16>
    %c0_16 = arith.constant 0 : index
    %c0_17 = arith.constant 0 : index
    %32 = vector.load %arg7[%c0_16, %c0_17] : memref<16x128xbf16, #tpu.memory_space<vmem>>, vector<16x128xbf16>
    tpu.vector_store %arg7[%c0_16, %c0_17], %31 {strides = array<i32>} : memref<16x128xbf16, #tpu.memory_space<vmem>>, vector<16x128xbf16>,
    return
  }
  func.func @transform_0(%arg0: i32) -> (i32, i32) {
    %c0_i32 = arith.constant 0 : i32
    %c0_i32_0 = arith.constant 0 : i32
    return %arg0, %c0_i32 : i32, i32
  }
  func.func @transform_1(%arg0: i32) -> (i32, i32) {
    %c0_i32 = arith.constant 0 : i32
    %c0_i32_0 = arith.constant 0 : i32
    %c0_i32_1 = arith.constant 0 : i32
    return %c0_i32, %c0_i32_0 : i32, i32
  }
  func.func @transform_2(%arg0: i32) -> (i32, i32) {
    %c0_i32 = arith.constant 0 : i32
    %c0_i32_0 = arith.constant 0 : i32
    %c0_i32_1 = arith.constant 0 : i32
    return %c0_i32, %c0_i32_0 : i32, i32
  }
  func.func @transform_3(%arg0: i32) -> (i32, i32) {
    %c0_i32 = arith.constant 0 : i32
    %c0_i32_0 = arith.constant 0 : i32
    return %arg0, %c0_i32 : i32, i32
  }
  func.func @transform_4(%arg0: i32) -> (i32, i32) {
    %c0_i32 = arith.constant 0 : i32
    %c0_i32_0 = arith.constant 0 : i32
    %c0_i32_1 = arith.constant 0 : i32
    return %c0_i32, %c0_i32_0 : i32, i32
  }
  func.func @transform_5(%arg0: i32) -> (i32, i32) {
    %c0_i32 = arith.constant 0 : i32
    %c0_i32_0 = arith.constant 0 : i32
    %c0_i32_1 = arith.constant 0 : i32
    return %c0_i32, %c0_i32_0 : i32, i32
  }
  func.func @transform_6(%arg0: i32) -> (i32, i32) {
    %c0_i32 = arith.constant 0 : i32
    %c0_i32_0 = arith.constant 0 : i32
    return %arg0, %c0_i32 : i32, i32
  }
}

module attributes {stable_mosaic.version = 11 : i64} {
  func.func @_dense_single_kernel(%arg0: i32, %arg1: i32, %arg2: memref<16x128xbf16, #tpu.memory_space<vmem>>, %arg3: memref<128x256xbf16, #tpu.memory_space<vmem>>, %arg4: memref<1x256xf32, #tpu.memory_space<vmem>>, %arg5: memref<16x256xbf16, #tpu.memory_space<vmem>>) attributes {dimension_semantics = [#tpu.dimension_semantics<parallel>, #tpu.dimension_semantics<parallel>], iteration_bounds = array<i64: 1, 1>, scalar_prefetch = 0 : i64, scratch_operands = 0 : i64, tpu.core_type = #tpu.core_type<tc>, window_params = [{transform_indices = @transform_0, window_bounds = array<i64: 16, 128>}, {transform_indices = @transform_1, window_bounds = array<i64: 128, 256>}, {transform_indices = @transform_2, window_bounds = array<i64: 1, 256>}, {transform_indices = @transform_3, window_bounds = array<i64: 16, 256>}]} {
    %c0 = arith.constant 0 : index
    %c0_0 = arith.constant 0 : index
    %0 = vector.load %arg2[%c0, %c0_0] : memref<16x128xbf16, #tpu.memory_space<vmem>>, vector<16x128xbf16>
    %c0_1 = arith.constant 0 : index
    %c0_2 = arith.constant 0 : index
    %1 = vector.load %arg3[%c0_1, %c0_2] : memref<128x256xbf16, #tpu.memory_space<vmem>>, vector<128x256xbf16>
    %cst = arith.constant dense<0.000000e+00> : vector<16x256xf32>
    %2 = tpu.matmul %0, %1, %cst {dimension_numbers = #tpu.dot_dimension_numbers<[1], [0], [0], [1], [0, 0, 1, 1], [], []>} : vector<16x128xbf16>, vector<128x256xbf16>, vector<16x256xf32> -> vector<16x256xf32>
    %c0_3 = arith.constant 0 : index
    %c0_4 = arith.constant 0 : index
    %3 = vector.load %arg4[%c0_3, %c0_4] : memref<1x256xf32, #tpu.memory_space<vmem>>, vector<1x256xf32>
    %4 = vector.broadcast %3 : vector<1x256xf32> to vector<16x256xf32>
    %5 = arith.addf %2, %4 : vector<16x256xf32>
    %cst_5 = arith.constant 5.000000e-01 : f32
    %6 = vector.broadcast %cst_5 : f32 to vector<16x256xf32>
    %7 = arith.mulf %6, %5 : vector<16x256xf32>
    %cst_6 = arith.constant 4.471500e-02 : f32
    %8 = vector.broadcast %cst_6 : f32 to vector<16x256xf32>
    %9 = arith.mulf %8, %5 : vector<16x256xf32>
    %10 = arith.mulf %9, %5 : vector<16x256xf32>
    %11 = arith.mulf %10, %5 : vector<16x256xf32>
    %12 = arith.addf %5, %11 : vector<16x256xf32>
    %cst_7 = arith.constant 0.797884583 : f32
    %13 = vector.broadcast %cst_7 : f32 to vector<16x256xf32>
    %14 = arith.mulf %13, %12 : vector<16x256xf32>
    %15 = math.tanh %14 : vector<16x256xf32>
    %cst_8 = arith.constant 1.000000e+00 : f32
    %16 = vector.broadcast %cst_8 : f32 to vector<16x256xf32>
    %17 = arith.addf %16, %15 : vector<16x256xf32>
    %18 = arith.mulf %7, %17 : vector<16x256xf32>
    %19 = arith.truncf %18 : vector<16x256xf32> to vector<16x256xbf16>
    %c0_9 = arith.constant 0 : index
    %c0_10 = arith.constant 0 : index
    %20 = vector.load %arg5[%c0_9, %c0_10] : memref<16x256xbf16, #tpu.memory_space<vmem>>, vector<16x256xbf16>
    tpu.vector_store %arg5[%c0_9, %c0_10], %19 {strides = array<i32>} : memref<16x256xbf16, #tpu.memory_space<vmem>>, vector<16x256xbf16>,
    return
  }
  func.func @transform_0(%arg0: i32, %arg1: i32) -> (i32, i32) {
    %c0_i32 = arith.constant 0 : i32
    %c0_i32_0 = arith.constant 0 : i32
    return %arg0, %c0_i32 : i32, i32
  }
  func.func @transform_1(%arg0: i32, %arg1: i32) -> (i32, i32) {
    %c0_i32 = arith.constant 0 : i32
    %c0_i32_0 = arith.constant 0 : i32
    return %c0_i32, %arg1 : i32, i32
  }
  func.func @transform_2(%arg0: i32, %arg1: i32) -> (i32, i32) {
    %c0_i32 = arith.constant 0 : i32
    %c0_i32_0 = arith.constant 0 : i32
    return %c0_i32, %arg1 : i32, i32
  }
  func.func @transform_3(%arg0: i32, %arg1: i32) -> (i32, i32) {
    %c0_i32 = arith.constant 0 : i32
    return %arg0, %arg1 : i32, i32
  }
}

module attributes {stable_mosaic.version = 11 : i64} {
  func.func @_dense_single_kernel(%arg0: i32, %arg1: i32, %arg2: memref<2x128xbf16, #tpu.memory_space<vmem>>, %arg3: memref<128x128xbf16, #tpu.memory_space<vmem>>, %arg4: memref<1x128xf32, #tpu.memory_space<vmem>>, %arg5: memref<2x128xbf16, #tpu.memory_space<vmem>>) attributes {dimension_semantics = [#tpu.dimension_semantics<parallel>, #tpu.dimension_semantics<parallel>], iteration_bounds = array<i64: 1, 1>, scalar_prefetch = 0 : i64, scratch_operands = 0 : i64, tpu.core_type = #tpu.core_type<tc>, window_params = [{transform_indices = @transform_0, window_bounds = array<i64: 2, 128>}, {transform_indices = @transform_1, window_bounds = array<i64: 128, 128>}, {transform_indices = @transform_2, window_bounds = array<i64: 1, 128>}, {transform_indices = @transform_3, window_bounds = array<i64: 2, 128>}]} {
    %c0 = arith.constant 0 : index
    %c0_0 = arith.constant 0 : index
    %0 = vector.load %arg2[%c0, %c0_0] : memref<2x128xbf16, #tpu.memory_space<vmem>>, vector<2x128xbf16>
    %c0_1 = arith.constant 0 : index
    %c0_2 = arith.constant 0 : index
    %1 = vector.load %arg3[%c0_1, %c0_2] : memref<128x128xbf16, #tpu.memory_space<vmem>>, vector<128x128xbf16>
    %cst = arith.constant dense<0.000000e+00> : vector<2x128xf32>
    %2 = tpu.matmul %0, %1, %cst {dimension_numbers = #tpu.dot_dimension_numbers<[1], [0], [0], [1], [0, 0, 1, 1], [], []>} : vector<2x128xbf16>, vector<128x128xbf16>, vector<2x128xf32> -> vector<2x128xf32>
    %c0_3 = arith.constant 0 : index
    %c0_4 = arith.constant 0 : index
    %3 = vector.load %arg4[%c0_3, %c0_4] : memref<1x128xf32, #tpu.memory_space<vmem>>, vector<1x128xf32>
    %4 = vector.broadcast %3 : vector<1x128xf32> to vector<2x128xf32>
    %5 = arith.addf %2, %4 : vector<2x128xf32>
    %6 = math.tanh %5 : vector<2x128xf32>
    %7 = arith.truncf %6 : vector<2x128xf32> to vector<2x128xbf16>
    %c0_5 = arith.constant 0 : index
    %c0_6 = arith.constant 0 : index
    %8 = vector.load %arg5[%c0_5, %c0_6] : memref<2x128xbf16, #tpu.memory_space<vmem>>, vector<2x128xbf16>
    tpu.vector_store %arg5[%c0_5, %c0_6], %7 {strides = array<i32>} : memref<2x128xbf16, #tpu.memory_space<vmem>>, vector<2x128xbf16>,
    return
  }
  func.func @transform_0(%arg0: i32, %arg1: i32) -> (i32, i32) {
    %c0_i32 = arith.constant 0 : i32
    %c0_i32_0 = arith.constant 0 : i32
    return %arg0, %c0_i32 : i32, i32
  }
  func.func @transform_1(%arg0: i32, %arg1: i32) -> (i32, i32) {
    %c0_i32 = arith.constant 0 : i32
    %c0_i32_0 = arith.constant 0 : i32
    return %c0_i32, %arg1 : i32, i32
  }
  func.func @transform_2(%arg0: i32, %arg1: i32) -> (i32, i32) {
    %c0_i32 = arith.constant 0 : i32
    %c0_i32_0 = arith.constant 0 : i32
    return %c0_i32, %arg1 : i32, i32
  }
  func.func @transform_3(%arg0: i32, %arg1: i32) -> (i32, i32) {
    %c0_i32 = arith.constant 0 : i32
    return %arg0, %arg1 : i32, i32
  }
}

module attributes {stable_mosaic.version = 11 : i64} {
  func.func @_dense_single_kernel(%arg0: i32, %arg1: i32, %arg2: memref<2x128xbf16, #tpu.memory_space<vmem>>, %arg3: memref<128x3xbf16, #tpu.memory_space<vmem>>, %arg4: memref<1x3xf32, #tpu.memory_space<vmem>>, %arg5: memref<2x3xf32, #tpu.memory_space<vmem>>) attributes {dimension_semantics = [#tpu.dimension_semantics<parallel>, #tpu.dimension_semantics<parallel>], iteration_bounds = array<i64: 1, 1>, scalar_prefetch = 0 : i64, scratch_operands = 0 : i64, tpu.core_type = #tpu.core_type<tc>, window_params = [{transform_indices = @transform_0, window_bounds = array<i64: 2, 128>}, {transform_indices = @transform_1, window_bounds = array<i64: 128, 3>}, {transform_indices = @transform_2, window_bounds = array<i64: 1, 3>}, {transform_indices = @transform_3, window_bounds = array<i64: 2, 3>}]} {
    %c0 = arith.constant 0 : index
    %c0_0 = arith.constant 0 : index
    %0 = vector.load %arg2[%c0, %c0_0] : memref<2x128xbf16, #tpu.memory_space<vmem>>, vector<2x128xbf16>
    %c0_1 = arith.constant 0 : index
    %c0_2 = arith.constant 0 : index
    %1 = vector.load %arg3[%c0_1, %c0_2] : memref<128x3xbf16, #tpu.memory_space<vmem>>, vector<128x3xbf16>
    %cst = arith.constant dense<0.000000e+00> : vector<2x3xf32>
    %2 = tpu.matmul %0, %1, %cst {dimension_numbers = #tpu.dot_dimension_numbers<[1], [0], [0], [1], [0, 0, 1, 1], [], []>} : vector<2x128xbf16>, vector<128x3xbf16>, vector<2x3xf32> -> vector<2x3xf32>
    %c0_3 = arith.constant 0 : index
    %c0_4 = arith.constant 0 : index
    %3 = vector.load %arg4[%c0_3, %c0_4] : memref<1x3xf32, #tpu.memory_space<vmem>>, vector<1x3xf32>
    %4 = vector.broadcast %3 : vector<1x3xf32> to vector<2x3xf32>
    %5 = arith.addf %2, %4 : vector<2x3xf32>
    %c0_5 = arith.constant 0 : index
    %c0_6 = arith.constant 0 : index
    %6 = vector.load %arg5[%c0_5, %c0_6] : memref<2x3xf32, #tpu.memory_space<vmem>>, vector<2x3xf32>
    tpu.vector_store %arg5[%c0_5, %c0_6], %5 {strides = array<i32>} : memref<2x3xf32, #tpu.memory_space<vmem>>, vector<2x3xf32>,
    return
  }
  func.func @transform_0(%arg0: i32, %arg1: i32) -> (i32, i32) {
    %c0_i32 = arith.constant 0 : i32
    %c0_i32_0 = arith.constant 0 : i32
    return %arg0, %c0_i32 : i32, i32
  }
  func.func @transform_1(%arg0: i32, %arg1: i32) -> (i32, i32) {
    %c0_i32 = arith.constant 0 : i32
    %c0_i32_0 = arith.constant 0 : i32
    return %c0_i32, %arg1 : i32, i32
  }
  func.func @transform_2(%arg0: i32, %arg1: i32) -> (i32, i32) {
    %c0_i32 = arith.constant 0 : i32
    %c0_i32_0 = arith.constant 0 : i32
    return %c0_i32, %arg1 : i32, i32
  }
  func.func @transform_3(%arg0: i32, %arg1: i32) -> (i32, i32) {
    %c0_i32 = arith.constant 0 : i32
    return %arg0, %arg1 : i32, i32
  }
}

</mosaic_0001>

<bundles_post_ra>
// kernel: _lambda_.14
= control target key start
LH: loop header
LB: loop body
LE: loop exit
PB: predicated region body
PF: predicated region fallthrough
CT: control target
= control target key end

     0   :  { %v410_v0 = vmov 0.0   ;;  %vm411_vm0 = vmmov 0   ;;  %v412_v3 = vmov 0   ;;  %v51_v27 = vlaneseq  ;;  %s523_s1 = inlined_call_operand.vmem [shape: bf16[128,384], index: 1, kind: input, shape index: {}]   ;;  %s524_s0 = inlined_call_operand.vmem [shape: bf16[16,128], index: 0, kind: input, shape index: {}]   ;;  %s525_s2 = inlined_call_operand.vmem [shape: f32[1,384], index: 2, kind: input, shape index: {}]   ;;  %s526_s3 = inlined_call_operand.vmem [shape: bf16[16,384], index: 3, kind: output, shape index: {}]  }
   0x1   :  { %354 = vmatprep.subr.bf16.mxu1 %v410_v0  ;;  %v377_v1 = vld [vmem:[%s523_s1 + $0x4] ss:$12 sps:$4 sm:$0xff]   ;;  %370 = vmatprep.mubr.msk.bf16.mxu1 %vm411_vm0, %v410_v0  ;;  %v379_v2 = vld [vmem:[%s523_s1 + $0x8] ss:$12 sps:$4 sm:$0xff]   ;;  %v380_v4 = vld [vmem:[%s523_s1] ss:$12 sps:$4 sm:$0xff]  }
   0x2   :  { %232 = vmatprep.mubr.bf16.mxu0 %v412_v3  ;;  %200 = vmatprep.subr.bf16.mxu0 %v377_v1  ;;  %v381_v5 = vld [vmem:[%s523_s1 + $0x1c] ss:$12 sps:$4 sm:$0xff]   ;;  %v383_v6 = vld [vmem:[%s523_s1 + $0x20] ss:$12 sps:$4 sm:$0xff]   ;;  %v384_v7 = vld [vmem:[%s523_s1 + $0x18] ss:$12 sps:$4 sm:$0xff]  }
   0x3   :  { %355 = vmatpush3.bf16.msra.mxu1 %v379_v2  ;;  %201 = vmatpush1.bf16.msra.mxu0 %v380_v4  ;;  %v385_v8 = vld [vmem:[%s523_s1 + $0x34] ss:$12 sps:$4 sm:$0xff]   ;;  %v387_v9 = vld [vmem:[%s523_s1 + $0x38] ss:$12 sps:$4 sm:$0xff]   ;;  %v388_v10 = vld [vmem:[%s523_s1 + $0x30] ss:$12 sps:$4 sm:$0xff]  }
   0x4   :  { %356 = vmatprep.subr.bf16.mxu1 %v410_v0  ;;  %202 = vmatprep.subr.bf16.mxu0 %v381_v5  ;;  %v389_v11 = vld [vmem:[%s523_s1 + $0x4c] ss:$12 sps:$4 sm:$0xff]   ;;  %v391_v12 = vld [vmem:[%s523_s1 + $0x50] ss:$12 sps:$4 sm:$0xff]   ;;  %v392_v13 = vld [vmem:[%s523_s1 + $0x48] ss:$12 sps:$4 sm:$0xff]  }
   0x5   :  { %v393_v14 = vld [vmem:[%s523_s1 + $0x64] ss:$12 sps:$4 sm:$0xff]   ;;  %v395_v15 = vld [vmem:[%s523_s1 + $0x68] ss:$12 sps:$4 sm:$0xff]   ;;  %v396_v16 = vld [vmem:[%s523_s1 + $0x60] ss:$12 sps:$4 sm:$0xff]  }
   0x6   :  { %v397_v17 = vld [vmem:[%s523_s1 + $0x7c] ss:$12 sps:$4 sm:$0xff]   ;;  %v399_v18 = vld [vmem:[%s523_s1 + $0x80] ss:$12 sps:$4 sm:$0xff]   ;;  %v400_v19 = vld [vmem:[%s523_s1 + $0x78] ss:$12 sps:$4 sm:$0xff]  }
   0x7   :  { %357 = vmatpush3.bf16.msra.mxu1 %v383_v6  ;;  %203 = vmatpush1.bf16.msra.mxu0 %v384_v7  ;;  %v401_v20 = vld [vmem:[%s523_s1 + $0x94] ss:$12 sps:$4 sm:$0xff]   ;;  %v403_v21 = vld [vmem:[%s523_s1 + $0x98] ss:$12 sps:$4 sm:$0xff]   ;;  %v404_v22 = vld [vmem:[%s523_s1 + $0x90] ss:$12 sps:$4 sm:$0xff]  }
   0x8   :  { %358 = vmatprep.subr.bf16.mxu1 %v410_v0  ;;  %204 = vmatprep.subr.bf16.mxu0 %v385_v8  ;;  %v405_v23 = vld [vmem:[%s523_s1 + $0xac] ss:$12 sps:$4 sm:$0xff]   ;;  %v407_v24 = vld [vmem:[%s523_s1 + $0xb0] ss:$12 sps:$4 sm:$0xff]   ;;  %v408_v25 = vld [vmem:[%s523_s1 + $0xa8] ss:$12 sps:$4 sm:$0xff]  }
   0x9   :  { %v409_v26 = vld [vmem:[%s524_s0] sm:$0xff]   ;;  %v52_v28 = vshrl.u32 %v51_v27, 7 }
   0xa   :  { %v49_v30 = vld [vmem:[%s525_s2] sm:$0x7] }
   0xb   :  { %359 = vmatpush3.bf16.msra.mxu1 %v387_v9  ;;  %205 = vmatpush1.bf16.msra.mxu0 %v388_v10  ;;  %v61_v29 = vsub.s32 2, %v52_v28  ;;  %v53_v31 = vsub.s32 0, %v52_v28  ;;  %v57_v32 = vsub.s32 1, %v52_v28 }
   0xc   :  { %360 = vmatprep.subr.bf16.mxu1 %v410_v0  ;;  %206 = vmatprep.subr.bf16.mxu0 %v389_v11 }
   0xd   :  { %v62_v33 = vrot.slane %v49_v30, %v61_v29  ;;  %v54_v34 = vrot.slane %v49_v30, %v53_v31  ;;  %v58_v35 = vrot.slane %v49_v30, %v57_v32 }
   0xf   :  { %361 = vmatpush3.bf16.msra.mxu1 %v391_v12  ;;  %207 = vmatpush1.bf16.msra.mxu0 %v392_v13 }
  0x10   :  { %362 = vmatprep.subr.bf16.mxu1 %v410_v0  ;;  %208 = vmatprep.subr.bf16.mxu0 %v393_v14 }
  0x13   :  { %363 = vmatpush3.bf16.msra.mxu1 %v395_v15  ;;  %209 = vmatpush1.bf16.msra.mxu0 %v396_v16 }
  0x14   :  { %364 = vmatprep.subr.bf16.mxu1 %v410_v0  ;;  %210 = vmatprep.subr.bf16.mxu0 %v397_v17 }
  0x17   :  { %365 = vmatpush3.bf16.msra.mxu1 %v399_v18  ;;  %211 = vmatpush1.bf16.msra.mxu0 %v400_v19 }
  0x18   :  { %366 = vmatprep.subr.bf16.mxu1 %v410_v0  ;;  %212 = vmatprep.subr.bf16.mxu0 %v401_v20 }
  0x1b   :  { %367 = vmatpush3.bf16.msra.mxu1 %v403_v21  ;;  %213 = vmatpush1.bf16.msra.mxu0 %v404_v22 }
  0x1c   :  { %368 = vmatprep.subr.bf16.mxu1 %v410_v0  ;;  %214 = vmatprep.subr.bf16.mxu0 %v405_v23 }
  0x1f   :  { %369 = vmatpush3.bf16.msra.mxu1 %v407_v24  ;;  %215 = vmatpush1.bf16.msra.mxu0 %v408_v25 }
  0x22   :  { %371 = vmatmul.mubr.bf16.vlgmr.msra.gmra.mrb[0].mxu1 %v409_v26  ;;  %233 = vmatmul.mubr.bf16.vlgmr.msra.gmra.mrb[0].mxu0 %v409_v26 }
  0xf5   :  { %v277_v36 = vpop.f32.mrb[0].mxu1  ;;  %v234_v38 = vpop.f32.mrb[0].mxu0 }
  0xf6   :  { %v278_v37 = vadd.f32 %v277_v36, %v62_v33  ;;  %v372_v39 = vpop.f32.mrb[1].mxu1  ;;  %v235_v40 = vadd.f32 %v234_v38, %v54_v34  ;;  %v236_v41 = vpop.f32.mrb[1].mxu0 }
  0xf7   :  { %v280_v42 = vpop.f32.mrb[2].mxu1  ;;  %v237_v44 = vadd.f32 %v236_v41, %v58_v35  ;;  %v238_v46 = vpop.f32.mrb[2].mxu0 }
  0xf8   :  { %v342_v43 = vpack.c.bf16 %v278_v37, %v278_v37  ;;  %v281_v45 = vadd.f32 %v280_v42, %v62_v33  ;;  %v373_v47 = vpop.f32.mrb[3].mxu1  ;;  %v239_v48 = vadd.f32 %v238_v46, %v54_v34  ;;  %v240_v49 = vpop.f32.mrb[3].mxu0 }
  0xf9   :  { %v341_v50 = vpack.c.bf16 %v237_v44, %v235_v40  ;;  %v241_v52 = vadd.f32 %v240_v49, %v58_v35 }
  0xfa   :  { %305 = vst [vmem:[%s526_s3 + $0x8] sm:$0xf] %v342_v43  ;;  %v344_v51 = vpack.c.bf16 %v281_v45, %v281_v45 }
  0xfb   :  { %304 = vst [vmem:[%s526_s3] sm:$0xff] %v341_v50  ;;  %v343_v53 = vpack.c.bf16 %v241_v52, %v239_v48 }
  0xfc   :  { %307 = vst [vmem:[%s526_s3 + $0x14] sm:$0xf] %v344_v51 }
  0xfd   :  { %306 = vst [vmem:[%s526_s3 + $0xc] sm:$0xff] %v343_v53 }

// kernel: _lambda_.13
= control target key start
LH: loop header
LB: loop body
LE: loop exit
PB: predicated region body
PF: predicated region fallthrough
CT: control target
= control target key end

     0   :  { %s124_s0 = inlined_call_operand.vmem [shape: bf16[16,128], index: 0, kind: input, shape index: {}]   ;;  %s125_s1 = inlined_call_operand.vmem [shape: f32[1,128], index: 1, kind: input, shape index: {}]   ;;  %s126_s2 = inlined_call_operand.vmem [shape: f32[1,128], index: 2, kind: input, shape index: {}]   ;;  %s127_s3 = inlined_call_operand.vmem [shape: bf16[16,128], index: 3, kind: output, shape index: {}]  }
   0x1   :  { %v80_v0 = vld [vmem:[%s124_s0] sm:$0xff]  }
   0x2   :  { %v81_v1 = vunpack.c.l.bf16 %v80_v0  ;;  %v82_v2 = vunpack.c.h.bf16 %v80_v0  ;;  %v73_v19 = vld [vmem:[%s125_s1] ss:$0 sm:$0xff] }
   0x3   :  { %v74_v23 = vld [vmem:[%s126_s2] ss:$0 sm:$0xff] }
   0x4   :  { %20 = vadd.xlane.f32.xlu0 %v81_v1 }
   0x8   :  { %22 = vadd.xlane.f32.xlu0 %v82_v2 }
  0x91   :  { %v21_v3 = vpop.xlane.xlu0 %20 }
  0x92   :  { %v25_v4 = vmul.f32 0.0078125, %v21_v3 }
  0x94   :  { %v27_v5 = vsub.f32 %v81_v1, %v25_v4 }
  0x95   :  { %v23_v6 = vpop.xlane.xlu0 %22 }
  0x96   :  { %v26_v7 = vmul.f32 0.0078125, %v23_v6  ;;  %v29_v8 = vmul.f32 %v27_v5, %v27_v5 }
  0x98   :  { %v28_v9 = vsub.f32 %v82_v2, %v26_v7  ;;  %31 = vadd.xlane.f32.xlu1 %v29_v8 }
  0x9a   :  { %v30_v10 = vmul.f32 %v28_v9, %v28_v9 }
  0x9c   :  { %33 = vadd.xlane.f32.xlu1 %v30_v10 }
 0x125   :  { %v32_v11 = vpop.xlane.xlu1 %31 }
 0x126   :  { %v35_v12 = vmul.f32 0.0078125, %v32_v11 }
 0x128   :  { %v37_v13 = vadd.f32 1e-12, %v35_v12 }
 0x129   :  { %v34_v14 = vpop.xlane.xlu1 %33 }
 0x12a   :  { %88 = vrsqrt.f32 %v37_v13  ;;  %v36_v15 = vmul.f32 0.0078125, %v34_v14 }
 0x12c   :  { %v38_v16 = vadd.f32 1e-12, %v36_v15 }
 0x12e   :  { %90 = vrsqrt.f32 %v38_v16 }
 0x134   :  { %v89_v17 = vpop.eup %88 }
 0x135   :  { %v41_v18 = vmul.f32 %v89_v17, %v27_v5 }
 0x137   :  { %v49_v21 = vmul.f32 %v73_v19, %v41_v18 }
 0x138   :  { %v91_v20 = vpop.eup %90 }
 0x139   :  { %v42_v22 = vmul.f32 %v91_v20, %v28_v9  ;;  %v57_v25 = vadd.f32 %v74_v23, %v49_v21 }
 0x13b   :  { %v50_v24 = vmul.f32 %v73_v19, %v42_v22 }
 0x13d   :  { %v58_v26 = vadd.f32 %v74_v23, %v50_v24 }
 0x13f   :  { %v86_v27 = vpack.c.bf16 %v58_v26, %v57_v25 }
 0x141   :  { %87 = vst [vmem:[%s127_s3] sm:$0xff] %v86_v27  }

// kernel: _lambda_.16
= control target key start
LH: loop header
LB: loop body
LE: loop exit
PB: predicated region body
PF: predicated region fallthrough
CT: control target
= control target key end

     0   :  { %v274_v0 = vmov 0.0   ;;  %vm275_vm0 = vmmov 0   ;;  %s353_s1 = inlined_call_operand.vmem [shape: bf16[128,128], index: 1, kind: input, shape index: {}]   ;;  %s354_s0 = inlined_call_operand.vmem [shape: bf16[16,128], index: 0, kind: input, shape index: {}]   ;;  %s355_s3 = inlined_call_operand.vmem [shape: bf16[16,128], index: 3, kind: input, shape index: {}]   ;;  %s356_s2 = inlined_call_operand.vmem [shape: f32[1,128], index: 2, kind: input, shape index: {}]   ;;  %s357_s4 = inlined_call_operand.vmem [shape: f32[1,128], index: 4, kind: input, shape index: {}]   ;;  %s358_s5 = inlined_call_operand.vmem [shape: f32[1,128], index: 5, kind: input, shape index: {}]   ;;  %s359_s6 = inlined_call_operand.vmem [shape: bf16[16,128], index: 6, kind: output, shape index: {}]  }
   0x1   :  { %239 = vmatprep.subr.bf16.mxu0 %v274_v0  ;;  %v261_v1 = vld [vmem:[%s353_s1] sm:$0xff]   ;;  %255 = vmatprep.mubr.msk.bf16.mxu0 %vm275_vm0, %v274_v0  ;;  %v262_v2 = vld [vmem:[%s353_s1 + $0x8] sm:$0xff]   ;;  %v263_v3 = vld [vmem:[%s353_s1 + $0x10] sm:$0xff]  }
   0x2   :  { %240 = vmatpush3.bf16.msra.mxu0 %v261_v1  ;;  %v264_v4 = vld [vmem:[%s353_s1 + $0x18] sm:$0xff]   ;;  %v265_v5 = vld [vmem:[%s353_s1 + $0x20] sm:$0xff]   ;;  %v266_v6 = vld [vmem:[%s353_s1 + $0x28] sm:$0xff]  }
   0x3   :  { %241 = vmatprep.subr.bf16.mxu0 %v274_v0  ;;  %v267_v7 = vld [vmem:[%s353_s1 + $0x30] sm:$0xff]   ;;  %v268_v8 = vld [vmem:[%s353_s1 + $0x38] sm:$0xff]   ;;  %v269_v9 = vld [vmem:[%s354_s0] sm:$0xff]  }
   0x4   :  { %v222_v10 = vld [vmem:[%s355_s3] sm:$0xff]  }
   0x5   :  { %v205_v11 = vld [vmem:[%s356_s2] ss:$0 sm:$0xff]  ;;  %v223_v12 = vunpack.c.l.bf16 %v222_v10  ;;  %v224_v20 = vunpack.c.h.bf16 %v222_v10 }
   0x6   :  { %242 = vmatpush3.bf16.msra.mxu0 %v262_v2  ;;  %v215_v38 = vld [vmem:[%s357_s4] ss:$0 sm:$0xff] }
   0x7   :  { %243 = vmatprep.subr.bf16.mxu0 %v274_v0  ;;  %v216_v42 = vld [vmem:[%s358_s5] ss:$0 sm:$0xff] }
   0xa   :  { %244 = vmatpush3.bf16.msra.mxu0 %v263_v3 }
   0xb   :  { %245 = vmatprep.subr.bf16.mxu0 %v274_v0 }
   0xe   :  { %246 = vmatpush3.bf16.msra.mxu0 %v264_v4 }
   0xf   :  { %247 = vmatprep.subr.bf16.mxu0 %v274_v0 }
  0x12   :  { %248 = vmatpush3.bf16.msra.mxu0 %v265_v5 }
  0x13   :  { %249 = vmatprep.subr.bf16.mxu0 %v274_v0 }
  0x16   :  { %250 = vmatpush3.bf16.msra.mxu0 %v266_v6 }
  0x17   :  { %251 = vmatprep.subr.bf16.mxu0 %v274_v0 }
  0x1a   :  { %252 = vmatpush3.bf16.msra.mxu0 %v267_v7 }
  0x1b   :  { %253 = vmatprep.subr.bf16.mxu0 %v274_v0 }
  0x1e   :  { %254 = vmatpush3.bf16.msra.mxu0 %v268_v8 }
  0x21   :  { %256 = vmatmul.mubr.bf16.vlgmr.msra.gmra.mrb[0].mxu0 %v269_v9 }
  0xf4   :  { %v137_v13 = vpop.f32.mrb[0].mxu0 }
  0xf5   :  { %v138_v14 = vadd.f32 %v205_v11, %v137_v13  ;;  %v257_v15 = vpop.f32.mrb[1].mxu0 }
  0xf6   :  { %v140_v16 = vpop.f32.mrb[2].mxu0 }
  0xf7   :  { %v141_v17 = vadd.f32 %v205_v11, %v140_v16  ;;  %v258_v18 = vpop.f32.mrb[3].mxu0  ;;  %v148_v19 = vadd.f32 %v223_v12, %v138_v14 }
  0xf9   :  { %152 = vadd.xlane.f32.xlu0 %v148_v19  ;;  %v149_v21 = vadd.f32 %v224_v20, %v141_v17 }
  0xfd   :  { %154 = vadd.xlane.f32.xlu0 %v149_v21 }
 0x186   :  { %v153_v22 = vpop.xlane.xlu0 %152 }
 0x187   :  { %v157_v23 = vmul.f32 0.0078125, %v153_v22 }
 0x189   :  { %v159_v24 = vsub.f32 %v148_v19, %v157_v23 }
 0x18a   :  { %v155_v25 = vpop.xlane.xlu0 %154 }
 0x18b   :  { %v158_v26 = vmul.f32 0.0078125, %v155_v25  ;;  %v161_v27 = vmul.f32 %v159_v24, %v159_v24 }
 0x18d   :  { %v160_v28 = vsub.f32 %v149_v21, %v158_v26  ;;  %163 = vadd.xlane.f32.xlu1 %v161_v27 }
 0x18f   :  { %v162_v29 = vmul.f32 %v160_v28, %v160_v28 }
 0x191   :  { %165 = vadd.xlane.f32.xlu1 %v162_v29 }
 0x21a   :  { %v164_v30 = vpop.xlane.xlu1 %163 }
 0x21b   :  { %v167_v31 = vmul.f32 0.0078125, %v164_v30 }
 0x21d   :  { %v169_v32 = vadd.f32 1e-12, %v167_v31 }
 0x21e   :  { %v166_v33 = vpop.xlane.xlu1 %165 }
 0x21f   :  { %270 = vrsqrt.f32 %v169_v32  ;;  %v168_v34 = vmul.f32 0.0078125, %v166_v33 }
 0x221   :  { %v170_v35 = vadd.f32 1e-12, %v168_v34 }
 0x223   :  { %272 = vrsqrt.f32 %v170_v35 }
 0x229   :  { %v271_v36 = vpop.eup %270 }
 0x22a   :  { %v173_v37 = vmul.f32 %v271_v36, %v159_v24 }
 0x22c   :  { %v181_v40 = vmul.f32 %v215_v38, %v173_v37 }
 0x22d   :  { %v273_v39 = vpop.eup %272 }
 0x22e   :  { %v174_v41 = vmul.f32 %v273_v39, %v160_v28  ;;  %v189_v44 = vadd.f32 %v216_v42, %v181_v40 }
 0x230   :  { %v182_v43 = vmul.f32 %v215_v38, %v174_v41 }
 0x232   :  { %v190_v45 = vadd.f32 %v216_v42, %v182_v43 }
 0x234   :  { %v228_v46 = vpack.c.bf16 %v190_v45, %v189_v44 }
 0x236   :  { %229 = vst [vmem:[%s359_s6] sm:$0xff] %v228_v46  }

// kernel: _lambda_.15
= control target key start
LH: loop header
LB: loop body
LE: loop exit
PB: predicated region body
PF: predicated region fallthrough
CT: control target
= control target key end

     0   :  { %s990_s15 = smov 0   ;;  %s992_s16 = smov 0   ;;  %s1089_s0 = inlined_call_operand.vmem [shape: bf16[2,8,384], index: 0, kind: input, shape index: {}, may-alias: {0,1,2}]   ;;  %s1090_s1 = inlined_call_operand.vmem [shape: bf16[2,8,384], index: 1, kind: input, shape index: {}, may-alias: {0,1,2}]   ;;  %s1091_s2 = inlined_call_operand.vmem [shape: bf16[2,8,384], index: 2, kind: input, shape index: {}, may-alias: {0,1,2}]   ;;  %s1092_s3 = inlined_call_operand.vmem [shape: f32[2,1,8], index: 3, kind: input, shape index: {}]   ;;  %s1093_s4 = inlined_call_operand.vmem [shape: bf16[2,8,128], index: 4, kind: output, shape index: {}]  }
   0x1   :  { %s994_s17 = smov 0  }
   0x2 LB: > { %s33_s18 = sadd.s32 1, %s954_s16  ;;  %p836_p0 = scmp.ge.s32.totalorder %s958_s17, 1  ;;  %s958_s17 = sphi %s994_s17, %s14_s17   ;;  %s954_s16 = sphi %s992_s16, %s1095_s16   ;;  %s950_s15 = sphi %s990_s15, %s1094_s15  }
   0x3   : > { %p35_p1 = scmp.ge.s32.totalorder %s33_s18, 2  ;;  %p251_p2 = scmp.lt.s32.totalorder %s958_s17, 3 }
   0x5   : > { %s1097_s18 = smov (%p35_p1, %s33_s18), 0  ;;  %p252_p3 = pnand %p836_p0, %p251_p2 }
   0x6   : > { %p314_p4 = scmp.lt.s32.totalorder (!%p252_p3), %s950_s15, 1  ;;  %v960_v0 = vmov (!%p252_p3), 0.0   ;;  %vm961_vm0 = vmmov (!%p252_p3), 0   ;;  %vm378_vm1 = vcmask (!%p252_p3), 523264   ;;  %vm369_vm2 = vcmask (!%p252_p3), 7168   ;;  %s964_s8 = smov (!%p252_p3), 64  }
   0x7   : > { %255 = sbr.rel (%p252_p3) target bundleno = 1391 (0x56f), region = 36  ;;  %863 = vmatprep.subr.bf16.mxu0 (!%p252_p3), %v960_v0  ;;  %368 = vst [vmem:[#allocation2] sm:$0xff] (!%p252_p3), %v960_v0  ;;  %865 = vmatprep.mubr.msk.bf16.mxu0 (!%p252_p3), %vm961_vm0, %v960_v0  ;;  %v962_v4 = vmov (!%p252_p3), -1e+30   ;;  %372 = vst.msk [vmem:[#allocation4] sm:$0xff] (!%p252_p3), %vm369_vm2, %v960_v0  ;;  %vm435_vm3 = vcmask (!%p252_p3), 64512  }
   0x8   : > { %869 = vmatprep.subr.bf16.mxu1 (!%p252_p3), %v960_v0  ;;  %871 = vmatprep.mubr.msk.bf16.mxu1 (!%p252_p3), %vm961_vm0, %v960_v0  ;;  %370 = vst.msk [vmem:[#allocation3] sm:$0xff] (!%p252_p3), %vm369_vm2, %v962_v4  ;;  %371 = vst.msk [vmem:[#allocation3 + $0x8] sm:$0xff] (!%p252_p3), %vm369_vm2, %v962_v4  ;;  %v963_v13 = vmov (!%p252_p3), 0   ;;  %vm463_vm4 = vcmask (!%p252_p3), 1043456   ;;  %vm667_vm5 = vcmask (!%p252_p3), 1048064  }
   0x9   : > { %373 = vst.msk [vmem:[#allocation4 + $0x8] sm:$0xff] (!%p252_p3), %vm369_vm2, %v960_v0  ;;  %919 = vset.pattern.permute.xlu0 (!%p252_p3), %v963_v13  ;;  %920 = vset.pattern.permute.xlu1 (!%p252_p3), %v963_v13 }
   0xe   : > { %s1099_s15 = smov (!%p314_p4, %s950_s15), 1  ;;  %v434_v36 = vld [vmem:[#allocation4] sm:$0xff] }
   0xf   : > { %s1018_s19 = smul.u32 12, %s1099_s15  ;;  %s355_s29 = scalar_lea.vmem %s1092_s3, %s1099_s15  ;;  %v433_v16 = vld [vmem:[#allocation3] sm:$0xff]  ;;  %v578_v55 = vld [vmem:[#allocation3 + $0x8] sm:$0xff] }
  0x10   : > { %v1046_v6 = vld [vmem:[%s355_s29] ss:$0 sm:$0xff]  ;;  %s840_s9 = sshll.u32 %s1099_s15, 2 }
  0x11   : > { %s852_s20 = sadd.s32 4, %s1018_s19  ;;  %s1025_s23 = scalar_lea.vmem %s1089_s0, %s1018_s19 }
  0x12   : > { %s334_s26 = scalar_lea.vmem %s1090_s1, %s852_s20  ;;  %v375_v3 = vld [vmem:[%s1025_s23] sm:$0xf]  ;;  %s854_s30 = sadd.s32 8, %s1018_s19 }
  0x13   : > { %v376_v1 = vld [vmem:[%s334_s26] sm:$0xf]  ;;  %s348_s7 = scalar_lea.vmem %s1091_s2, %s854_s30  ;;  %s362_s12 = scalar_lea.vmem %s1093_s4, %s840_s9 }
  0x14   : > { %v383_v2 = vsel %vm378_vm1, %v376_v1, 0  ;;  %v921_v14 = vld [vmem:[%s334_s26] ss:$0 sps:$4 sm:$0xff]  }
  0x15   : > { %864 = vmatpush3.bf16.xpose.msra.mxu0 %v383_v2  ;;  %527 = vrot.lane.b32.xlu1 %v921_v14, %s964_s8  ;;  %v922_v15 = vld [vmem:[%s1025_s23] ss:$0 sps:$4 sm:$0xff]  }
  0x16   : > { %881 = vmatprep.subr.bf16.mxu0 %v960_v0  ;;  %v923_v20 = vld [vmem:[%s348_s7] ss:$0 sps:$4 sm:$0xff]  }
  0x17   : > { %v377_v21 = vld [vmem:[%s348_s7] sm:$0xf] }
  0x18   : > { %v465_v22 = vsel %vm463_vm4, %v377_v21, 0 }
  0x19   : > { %522 = vrot.lane.b32.xlu1 %v922_v15, %s964_s8  ;;  %870 = vmatpush3.bf16.msra.mxu1 %v465_v22 }
  0x1a   : > { %875 = vmatprep.subr.bf16.mxu1 %v960_v0 }
  0x1c   : > { %866 = vmatmul.mubr.msk.bf16.vlgmr.msra.gmra.mrb[0].mxu0 %vm378_vm1, %v375_v3  ;;  %v580_v3 = vld [vmem:[#allocation4 + $0x8] sm:$0xff] }
  0x1d   : > { %883 = vmatprep.mubr.msk.bf16.mxu0 %vm961_vm0, %v960_v0 }
  0x87   : > { %v528_v28 = vpop.permute.xlu1 %527 }
  0x88   : > { %v533_v30 = vsel %vm378_vm1, %v528_v28, 0 }
  0x8b   : > { %v523_v33 = vpop.permute.xlu1 %522 }
  0xef   : > { %v419_v5 = vpop.f32.mrb[0].mxu0 }
  0xf0   : > { %v425_v7 = vmul.f32 0.125, %v419_v5  ;;  %v867_v8 = vpop.f32.mrb[1].mxu0 }
  0xf1   : > { %v422_v9 = vpop.f32.mrb[2].mxu0 }
  0xf2   : > { %v868_v10 = vpop.f32.mrb[3].mxu0  ;;  %v432_v11 = vadd.f32 %v1046_v6, %v425_v7 }
  0xf4   : > { %v436_v12 = vsel %vm435_vm3, %v432_v11, -inf }
  0xf5   : > { %437 = vmax.xlane.f32.xlu0 %v436_v12 }
 0x182   : > { %v438_v17 = vpop.xlane.xlu0 %437 }
 0x183   : > { %v439_v18 = vmax.f32 %v433_v16, %v438_v17 }
 0x185   : > { %v440_v19 = vsub.f32 %v433_v16, %v439_v18  ;;  %458 = vst.msk [vmem:[#allocation3] sm:$0xff] %vm369_vm2, %v439_v18  ;;  %445 = vperm.xlu0 %919, %v439_v18  }
 0x187   : > { %v441_v34 = vmul.f32 1.442695, %v440_v19 }
 0x189   : > { %607 = vrot.lane.b32.xlu0 %v923_v20, %s964_s8 }
 0x204   : > { %v446_v23 = vpop.permute.xlu0 %445 }
 0x205   : > { %v448_v24 = vsub.f32 %v432_v11, %v446_v23 }
 0x207   : > { %v449_v25 = vmul.f32 1.442695, %v448_v24 }
 0x208   : > { %v608_v26 = vpop.permute.xlu0 %607 }
 0x209   : > { %924 = vpow2.f32 %v449_v25  ;;  %v613_v27 = vsel %vm463_vm4, %v608_v26, 0 }
 0x20a   : > { %882 = vmatpush3.bf16.msra.mxu0 %v613_v27  ;;  %926 = vpow2.f32 %v441_v34 }
 0x213   : > { %v925_v29 = vpop.eup %924 }
 0x214   : > { %v452_v31 = vsel %vm435_vm3, %v925_v29, 0.0  ;;  %v459_v32 = vpack.c.bf16 %v925_v29, %v925_v29  ;;  %v927_v35 = vpop.eup %926 }
 0x215   : > { %453 = vadd.xlane.f32.xlu0 %v452_v31  ;;  %v451_v37 = vmul.f32 %v927_v35, %v434_v36 }
 0x216   : > { %872 = vmatmul.mubr.msk.bf16.vlgmr.msra.gmra.mrb[0].mxu1 %vm435_vm3, %v459_v32 }
 0x217   : > { %876 = vmatpush3.bf16.xpose.msra.mxu1 %v533_v30  ;;  %877 = vmatprep.mubr.msk.bf16.mxu1 %vm961_vm0, %v960_v0 }
 0x21e   : > { %878 = vmatmul.mubr.msk.bf16.vlgmr.msra.gmra.mrb[4].mxu1 %vm378_vm1, %v523_v33 }
 0x22b   : > { %510 = vperm.xlu0 %919, %v927_v35  }
 0x2a2   : > { %v454_v38 = vpop.xlane.xlu0 %453 }
 0x2a3   : > { %v455_v39 = vadd.f32 %v454_v38, %v451_v37 }
 0x2a5   : > { %457 = vst.msk [vmem:[#allocation4] sm:$0xff] %vm369_vm2, %v455_v39 }
 0x2aa   : > { %v511_v41 = vpop.permute.xlu0 %510 }
 0x2ab   : > { %v513_v42 = vmul.f32 0.0, %v511_v41 }
 0x2ac   : > { %v673_v40 = vld [vmem:[#allocation4] sm:$0xff] }
 0x2ad   : > { %676 = vperm.xlu0 %919, %v673_v40  }
 0x2e9   : > { %v501_v43 = vpop.f32.mrb[0].mxu1 }
 0x2ea   : > { %v514_v44 = vadd.f32 %v513_v42, %v501_v43  ;;  %v873_v45 = vpop.f32.mrb[1].mxu1 }
 0x2eb   : > { %v504_v46 = vpop.f32.mrb[2].mxu1 }
 0x2ec   : > { %515 = vst.msk [vmem:[#allocation2] sm:$0xff] %vm378_vm1, %v514_v44  ;;  %v874_v47 = vpop.f32.mrb[3].mxu1 }
 0x2f1   : > { %v569_v48 = vpop.f32.mrb[4].mxu1 }
 0x2f2   : > { %v575_v49 = vmul.f32 0.125, %v569_v48  ;;  %v879_v50 = vpop.f32.mrb[5].mxu1 }
 0x2f3   : > { %v572_v51 = vpop.f32.mrb[6].mxu1  ;;  %v655_v15 = vld [vmem:[#allocation2] sm:$0xff] }
 0x2f4   : > { %v880_v52 = vpop.f32.mrb[7].mxu1  ;;  %v576_v53 = vadd.f32 %v1046_v6, %v575_v49 }
 0x2f6   : > { %v581_v54 = vsel %vm435_vm3, %v576_v53, -inf }
 0x2f7   : > { %582 = vmax.xlane.f32.xlu1 %v581_v54 }
 0x32c   : > { %v677_v12 = vpop.permute.xlu0 %676 }
 0x384   : > { %v583_v56 = vpop.xlane.xlu1 %582 }
 0x385   : > { %v584_v57 = vmax.f32 %v578_v55, %v583_v56 }
 0x387   : > { %v585_v58 = vsub.f32 %v578_v55, %v584_v57  ;;  %602 = vst.msk [vmem:[#allocation3 + $0x8] sm:$0xff] %vm369_vm2, %v584_v57  ;;  %590 = vperm.xlu1 %920, %v584_v57  }
 0x389   : > { %v586_v1 = vmul.f32 1.442695, %v585_v58 }
 0x406   : > { %v591_v59 = vpop.permute.xlu1 %590 }
 0x407   : > { %v593_v60 = vsub.f32 %v576_v53, %v591_v59 }
 0x409   : > { %v594_v61 = vmul.f32 1.442695, %v593_v60 }
 0x40b   : > { %928 = vpow2.f32 %v594_v61 }
 0x40c   : > { %930 = vpow2.f32 %v586_v1 }
 0x40d   : > { %932 = vrcp.f32 %v677_v12 }
 0x415   : > { %v929_v62 = vpop.eup %928 }
 0x416   : > { %v597_v63 = vsel %vm435_vm3, %v929_v62, 0.0  ;;  %v603_v0 = vpack.c.bf16 %v929_v62, %v929_v62  ;;  %v931_v2 = vpop.eup %930 }
 0x417   : > { %598 = vadd.xlane.f32.xlu1 %v597_v63  ;;  %v596_v4 = vmul.f32 %v931_v2, %v580_v3  ;;  %v933_v19 = vpop.eup %932 }
 0x418   : > { %884 = vmatmul.mubr.msk.bf16.vlgmr.msra.gmra.mrb[4].mxu0 %vm435_vm3, %v603_v0 }
 0x428   : > { %658 = vperm.xlu1 %920, %v931_v2  }
 0x4a4   : > { %v599_v5 = vpop.xlane.xlu1 %598 }
 0x4a5   : > { %v600_v6 = vadd.f32 %v599_v5, %v596_v4 }
 0x4a7   : > { %601 = vst.msk [vmem:[#allocation4 + $0x8] sm:$0xff] %vm369_vm2, %v600_v6 }
 0x4a8   : > { %v659_v13 = vpop.permute.xlu1 %658 }
 0x4a9   : > { %v661_v16 = vmul.f32 %v659_v13, %v655_v15 }
 0x4ae   : > { %v681_v7 = vld [vmem:[#allocation4 + $0x8] sm:$0xff] }
 0x4af   : > { %684 = vperm.xlu0 %919, %v681_v7  }
 0x4eb   : > { %v649_v8 = vpop.f32.mrb[4].mxu0 }
 0x4ec   : > { %663 = vrot.lane.b32.xlu0 %v649_v8, %s964_s8  ;;  %v885_v9 = vpop.f32.mrb[5].mxu0 }
 0x4ed   : > { %v652_v10 = vpop.f32.mrb[6].mxu0 }
 0x4ee   : > { %v886_v11 = vpop.f32.mrb[7].mxu0 }
 0x52e   : > { %v685_v14 = vpop.permute.xlu0 %684 }
 0x52f   : > { %934 = vrcp.f32 %v685_v14 }
 0x539   : > { %v935_v20 = vpop.eup %934 }
 0x55e   : > { %v664_v17 = vpop.permute.xlu0 %663 }
 0x55f   : > { %v666_v18 = vadd.f32 %v664_v17, %v661_v16 }
 0x561   : > { %668 = vst.msk [vmem:[#allocation2] sm:$0xff] %vm667_vm5, %v666_v18 }
 0x568   : > { %v672_v21 = vld [vmem:[#allocation2] sm:$0xff] }
 0x569   : > { %v680_v22 = vmul.f32 %v933_v19, %v672_v21  ;;  %v688_v23 = vmul.f32 %v935_v20, %v672_v21 }
 0x56b   : > { %v689_v24 = vsel %vm378_vm1, %v680_v22, %v688_v23 }
 0x56c   : > { %v690_v25 = vpack.c.bf16 %v689_v24, %v689_v24 }
 0x56e   : > { %691 = vst [vmem:[%s362_s12] sm:$0xf] %v690_v25 }
 0x56f PF: > { %s14_s17 = sadd.s32 1, %s958_s17   ;;  %s1094_s15 = smov %s954_s16 }
 0x570   : > { %p11_p5 = scmp.ge.s32.totalorder %s14_s17, 4   ;;  %s1095_s16 = smov %s1097_s18 }
 0x572   :  { %13 = sbr.rel (!%p11_p5) target bundleno = 2 (0x2), region = 85 }

// kernel: _lambda_.18
= control target key start
LH: loop header
LB: loop body
LE: loop exit
PB: predicated region body
PF: predicated region fallthrough
CT: control target
= control target key end

     0   :  { %s456_s1 = inlined_call_operand.vmem [shape: bf16[256,128], index: 1, kind: input, shape index: {}]   ;;  %s457_s0 = inlined_call_operand.vmem [shape: bf16[16,256], index: 0, kind: input, shape index: {}]   ;;  %s458_s3 = inlined_call_operand.vmem [shape: bf16[16,128], index: 3, kind: input, shape index: {}]   ;;  %s459_s2 = inlined_call_operand.vmem [shape: f32[1,128], index: 2, kind: input, shape index: {}]   ;;  %s460_s4 = inlined_call_operand.vmem [shape: f32[1,128], index: 4, kind: input, shape index: {}]   ;;  %s461_s5 = inlined_call_operand.vmem [shape: f32[1,128], index: 5, kind: input, shape index: {}]   ;;  %s462_s6 = inlined_call_operand.vmem [shape: bf16[16,128], index: 6, kind: output, shape index: {}]  }
   0x1   :  { %v329_v0 = vld [vmem:[%s456_s1 + $0x40] sm:$0xff]   ;;  %v331_v2 = vld [vmem:[%s456_s1 + $0x48] sm:$0xff]   ;;  %v333_v4 = vld [vmem:[%s456_s1 + $0x50] sm:$0xff]  }
   0x2   :  { %v330_v1 = vld [vmem:[%s456_s1] sm:$0xff]   ;;  %307 = vmatprep.subr.bf16.mxu0 %v329_v0  ;;  %v332_v3 = vld [vmem:[%s456_s1 + $0x8] sm:$0xff]   ;;  %v334_v5 = vld [vmem:[%s456_s1 + $0x10] sm:$0xff]  }
   0x3   :  { %308 = vmatpush3.bf16.msra.mxu0 %v330_v1  ;;  %v335_v6 = vld [vmem:[%s456_s1 + $0x58] sm:$0xff]   ;;  %v337_v8 = vld [vmem:[%s456_s1 + $0x60] sm:$0xff]   ;;  %v339_v10 = vld [vmem:[%s456_s1 + $0x68] sm:$0xff]  }
   0x4   :  { %309 = vmatprep.subr.bf16.mxu0 %v331_v2  ;;  %v336_v7 = vld [vmem:[%s456_s1 + $0x18] sm:$0xff]   ;;  %v338_v9 = vld [vmem:[%s456_s1 + $0x20] sm:$0xff]   ;;  %v340_v12 = vld [vmem:[%s456_s1 + $0x28] sm:$0xff]  }
   0x5   :  { %v347_v11 = vld [vmem:[%s457_s0 + $0x4] ss:$8 sps:$4 sm:$0xff]   ;;  %v341_v13 = vld [vmem:[%s456_s1 + $0x70] sm:$0xff]   ;;  %v343_v15 = vld [vmem:[%s456_s1 + $0x78] sm:$0xff]  }
   0x6   :  { %203 = vmatprep.mubr.bf16.mxu0 %v347_v11  ;;  %v342_v14 = vld [vmem:[%s456_s1 + $0x30] sm:$0xff]   ;;  %v344_v16 = vld [vmem:[%s456_s1 + $0x38] sm:$0xff]   ;;  %v345_v17 = vld [vmem:[%s457_s0] ss:$8 sps:$4 sm:$0xff]  }
   0x7   :  { %310 = vmatpush3.bf16.msra.mxu0 %v332_v3  ;;  %v299_v18 = vld [vmem:[%s458_s3] sm:$0xff]  }
   0x8   :  { %311 = vmatprep.subr.bf16.mxu0 %v333_v4  ;;  %v273_v20 = vld [vmem:[%s459_s2] ss:$0 sm:$0xff]  ;;  %v300_v24 = vunpack.c.l.bf16 %v299_v18  ;;  %v301_v30 = vunpack.c.h.bf16 %v299_v18 }
   0x9   :  { %v292_v48 = vld [vmem:[%s460_s4] ss:$0 sm:$0xff] }
   0xa   :  { %v293_v52 = vld [vmem:[%s461_s5] ss:$0 sm:$0xff] }
   0xb   :  { %312 = vmatpush3.bf16.msra.mxu0 %v334_v5 }
   0xc   :  { %313 = vmatprep.subr.bf16.mxu0 %v335_v6 }
   0xf   :  { %314 = vmatpush3.bf16.msra.mxu0 %v336_v7 }
  0x10   :  { %315 = vmatprep.subr.bf16.mxu0 %v337_v8 }
  0x13   :  { %316 = vmatpush3.bf16.msra.mxu0 %v338_v9 }
  0x14   :  { %317 = vmatprep.subr.bf16.mxu0 %v339_v10 }
  0x17   :  { %318 = vmatpush3.bf16.msra.mxu0 %v340_v12 }
  0x18   :  { %319 = vmatprep.subr.bf16.mxu0 %v341_v13 }
  0x1b   :  { %320 = vmatpush3.bf16.msra.mxu0 %v342_v14 }
  0x1c   :  { %321 = vmatprep.subr.bf16.mxu0 %v343_v15 }
  0x1f   :  { %322 = vmatpush3.bf16.msra.mxu0 %v344_v16 }
  0x22   :  { %204 = vmatmul.mubr.bf16.vlgmr.msra.gmra.mrb[0].mxu0 %v345_v17 }
  0xf5   :  { %v323_v19 = vpop.f32.mrb[0].mxu0 }
  0xf6   :  { %v324_v21 = vpop.f32.mrb[1].mxu0 }
  0xf7   :  { %v325_v22 = vadd.f32 %v324_v21, %v323_v19  ;;  %v326_v23 = vpop.f32.mrb[2].mxu0 }
  0xf8   :  { %v327_v25 = vpop.f32.mrb[3].mxu0 }
  0xf9   :  { %v206_v26 = vadd.f32 %v325_v22, %v273_v20  ;;  %v328_v27 = vadd.f32 %v327_v25, %v326_v23 }
  0xfb   :  { %v209_v28 = vadd.f32 %v328_v27, %v273_v20  ;;  %v216_v29 = vadd.f32 %v300_v24, %v206_v26 }
  0xfd   :  { %220 = vadd.xlane.f32.xlu0 %v216_v29  ;;  %v217_v31 = vadd.f32 %v301_v30, %v209_v28 }
 0x101   :  { %222 = vadd.xlane.f32.xlu0 %v217_v31 }
 0x18a   :  { %v221_v32 = vpop.xlane.xlu0 %220 }
 0x18b   :  { %v225_v33 = vmul.f32 0.0078125, %v221_v32 }
 0x18d   :  { %v227_v34 = vsub.f32 %v216_v29, %v225_v33 }
 0x18e   :  { %v223_v35 = vpop.xlane.xlu0 %222 }
 0x18f   :  { %v226_v36 = vmul.f32 0.0078125, %v223_v35  ;;  %v229_v37 = vmul.f32 %v227_v34, %v227_v34 }
 0x191   :  { %v228_v38 = vsub.f32 %v217_v31, %v226_v36  ;;  %231 = vadd.xlane.f32.xlu1 %v229_v37 }
 0x193   :  { %v230_v39 = vmul.f32 %v228_v38, %v228_v38 }
 0x195   :  { %233 = vadd.xlane.f32.xlu1 %v230_v39 }
 0x21e   :  { %v232_v40 = vpop.xlane.xlu1 %231 }
 0x21f   :  { %v235_v41 = vmul.f32 0.0078125, %v232_v40 }
 0x221   :  { %v237_v42 = vadd.f32 1e-12, %v235_v41 }
 0x222   :  { %v234_v43 = vpop.xlane.xlu1 %233 }
 0x223   :  { %348 = vrsqrt.f32 %v237_v42  ;;  %v236_v44 = vmul.f32 0.0078125, %v234_v43 }
 0x225   :  { %v238_v45 = vadd.f32 1e-12, %v236_v44 }
 0x227   :  { %350 = vrsqrt.f32 %v238_v45 }
 0x22d   :  { %v349_v46 = vpop.eup %348 }
 0x22e   :  { %v241_v47 = vmul.f32 %v349_v46, %v227_v34 }
 0x230   :  { %v249_v50 = vmul.f32 %v292_v48, %v241_v47 }
 0x231   :  { %v351_v49 = vpop.eup %350 }
 0x232   :  { %v242_v51 = vmul.f32 %v351_v49, %v228_v38  ;;  %v257_v54 = vadd.f32 %v293_v52, %v249_v50 }
 0x234   :  { %v250_v53 = vmul.f32 %v292_v48, %v242_v51 }
 0x236   :  { %v258_v55 = vadd.f32 %v293_v52, %v250_v53 }
 0x238   :  { %v305_v56 = vpack.c.bf16 %v258_v55, %v257_v54 }
 0x23a   :  { %306 = vst [vmem:[%s462_s6] sm:$0xff] %v305_v56  }

// kernel: _lambda_.17
= control target key start
LH: loop header
LB: loop body
LE: loop exit
PB: predicated region body
PF: predicated region fallthrough
CT: control target
= control target key end

     0   :  { %v283_v1 = vmov 0   ;;  %v35_v18 = vlaneseq  ;;  %s364_s1 = inlined_call_operand.vmem [shape: bf16[128,256], index: 1, kind: input, shape index: {}]   ;;  %s365_s0 = inlined_call_operand.vmem [shape: bf16[16,128], index: 0, kind: input, shape index: {}]   ;;  %s366_s2 = inlined_call_operand.vmem [shape: f32[1,256], index: 2, kind: input, shape index: {}]   ;;  %s367_s3 = inlined_call_operand.vmem [shape: bf16[16,256], index: 3, kind: output, shape index: {}]  }
   0x1   :  { %v250_v0 = vld [vmem:[%s364_s1 + $0x4] ss:$8 sps:$4 sm:$0xff]   ;;  %163 = vmatprep.mubr.bf16.mxu0 %v283_v1  ;;  %v252_v2 = vld [vmem:[%s364_s1] ss:$8 sps:$4 sm:$0xff]   ;;  %v253_v3 = vld [vmem:[%s364_s1 + $0x14] ss:$8 sps:$4 sm:$0xff]  }
   0x2   :  { %131 = vmatprep.subr.bf16.mxu0 %v250_v0  ;;  %v255_v4 = vld [vmem:[%s364_s1 + $0x10] ss:$8 sps:$4 sm:$0xff]   ;;  %v256_v5 = vld [vmem:[%s364_s1 + $0x24] ss:$8 sps:$4 sm:$0xff]   ;;  %v258_v6 = vld [vmem:[%s364_s1 + $0x20] ss:$8 sps:$4 sm:$0xff]  }
   0x3   :  { %132 = vmatpush1.bf16.msra.mxu0 %v252_v2  ;;  %v259_v7 = vld [vmem:[%s364_s1 + $0x34] ss:$8 sps:$4 sm:$0xff]   ;;  %v261_v8 = vld [vmem:[%s364_s1 + $0x30] ss:$8 sps:$4 sm:$0xff]   ;;  %v262_v9 = vld [vmem:[%s364_s1 + $0x44] ss:$8 sps:$4 sm:$0xff]  }
   0x4   :  { %133 = vmatprep.subr.bf16.mxu0 %v253_v3  ;;  %v264_v10 = vld [vmem:[%s364_s1 + $0x40] ss:$8 sps:$4 sm:$0xff]   ;;  %v265_v11 = vld [vmem:[%s364_s1 + $0x54] ss:$8 sps:$4 sm:$0xff]   ;;  %v267_v12 = vld [vmem:[%s364_s1 + $0x50] ss:$8 sps:$4 sm:$0xff]  }
   0x5   :  { %v268_v13 = vld [vmem:[%s364_s1 + $0x64] ss:$8 sps:$4 sm:$0xff]   ;;  %v270_v14 = vld [vmem:[%s364_s1 + $0x60] ss:$8 sps:$4 sm:$0xff]   ;;  %v271_v15 = vld [vmem:[%s364_s1 + $0x74] ss:$8 sps:$4 sm:$0xff]  }
   0x6   :  { %v273_v16 = vld [vmem:[%s364_s1 + $0x70] ss:$8 sps:$4 sm:$0xff]   ;;  %v274_v17 = vld [vmem:[%s365_s0] sm:$0xff]   ;;  %v36_v19 = vshrl.u32 %v35_v18, 7 }
   0x7   :  { %134 = vmatpush1.bf16.msra.mxu0 %v255_v4  ;;  %v33_v21 = vld [vmem:[%s366_s2] sm:$0x3] }
   0x8   :  { %135 = vmatprep.subr.bf16.mxu0 %v256_v5  ;;  %v37_v20 = vsub.s32 0, %v36_v19  ;;  %v41_v22 = vsub.s32 1, %v36_v19 }
   0xa   :  { %v38_v23 = vrot.slane %v33_v21, %v37_v20  ;;  %v42_v24 = vrot.slane %v33_v21, %v41_v22 }
   0xb   :  { %136 = vmatpush1.bf16.msra.mxu0 %v258_v6 }
   0xc   :  { %137 = vmatprep.subr.bf16.mxu0 %v259_v7 }
   0xf   :  { %138 = vmatpush1.bf16.msra.mxu0 %v261_v8 }
  0x10   :  { %139 = vmatprep.subr.bf16.mxu0 %v262_v9 }
  0x13   :  { %140 = vmatpush1.bf16.msra.mxu0 %v264_v10 }
  0x14   :  { %141 = vmatprep.subr.bf16.mxu0 %v265_v11 }
  0x17   :  { %142 = vmatpush1.bf16.msra.mxu0 %v267_v12 }
  0x18   :  { %143 = vmatprep.subr.bf16.mxu0 %v268_v13 }
  0x1b   :  { %144 = vmatpush1.bf16.msra.mxu0 %v270_v14 }
  0x1c   :  { %145 = vmatprep.subr.bf16.mxu0 %v271_v15 }
  0x1f   :  { %146 = vmatpush1.bf16.msra.mxu0 %v273_v16 }
  0x22   :  { %164 = vmatmul.mubr.bf16.vlgmr.msra.gmra.mrb[0].mxu0 %v274_v17 }
  0xf5   :  { %v165_v25 = vpop.f32.mrb[0].mxu0 }
  0xf6   :  { %v166_v26 = vadd.f32 %v165_v25, %v38_v23  ;;  %v167_v27 = vpop.f32.mrb[1].mxu0 }
  0xf7   :  { %v168_v28 = vadd.f32 %v167_v27, %v42_v24  ;;  %v169_v29 = vpop.f32.mrb[2].mxu0 }
  0xf8   :  { %v178_v30 = vmul.f32 0.044715, %v166_v26  ;;  %v170_v31 = vadd.f32 %v169_v29, %v38_v23  ;;  %v171_v32 = vpop.f32.mrb[3].mxu0  ;;  %v174_v55 = vmul.f32 0.5, %v166_v26 }
  0xf9   :  { %v179_v33 = vmul.f32 0.044715, %v168_v28  ;;  %v172_v34 = vadd.f32 %v171_v32, %v42_v24  ;;  %v175_v58 = vmul.f32 0.5, %v168_v28 }
  0xfa   :  { %v182_v35 = vmul.f32 %v178_v30, %v166_v26  ;;  %v180_v36 = vmul.f32 0.044715, %v170_v31  ;;  %v176_v62 = vmul.f32 0.5, %v170_v31 }
  0xfb   :  { %v183_v37 = vmul.f32 %v179_v33, %v168_v28  ;;  %v181_v38 = vmul.f32 0.044715, %v172_v34  ;;  %v177_v1 = vmul.f32 0.5, %v172_v34 }
  0xfc   :  { %v186_v39 = vmul.f32 %v182_v35, %v166_v26  ;;  %v184_v40 = vmul.f32 %v180_v36, %v170_v31 }
  0xfd   :  { %v187_v41 = vmul.f32 %v183_v37, %v168_v28  ;;  %v185_v42 = vmul.f32 %v181_v38, %v172_v34 }
  0xfe   :  { %v190_v43 = vadd.f32 %v186_v39, %v166_v26  ;;  %v188_v44 = vmul.f32 %v184_v40, %v170_v31 }
  0xff   :  { %v191_v45 = vadd.f32 %v187_v41, %v168_v28  ;;  %v189_v46 = vmul.f32 %v185_v42, %v172_v34 }
 0x100   :  { %v194_v47 = vmul.f32 0.7978846, %v190_v43  ;;  %v192_v48 = vadd.f32 %v188_v44, %v170_v31 }
 0x101   :  { %v195_v49 = vmul.f32 0.7978846, %v191_v45  ;;  %v193_v50 = vadd.f32 %v189_v46, %v172_v34 }
 0x102   :  { %275 = vtanh.f32 %v194_v47  ;;  %v196_v51 = vmul.f32 0.7978846, %v192_v48 }
 0x103   :  { %277 = vtanh.f32 %v195_v49  ;;  %v197_v52 = vmul.f32 0.7978846, %v193_v50 }
 0x104   :  { %279 = vtanh.f32 %v196_v51 }
 0x105   :  { %281 = vtanh.f32 %v197_v52 }
 0x10c   :  { %v276_v53 = vpop.eup %275 }
 0x10d   :  { %v278_v54 = vpop.eup %277  ;;  %v202_v56 = vadd.f32 1.0, %v276_v53 }
 0x10e   :  { %v280_v57 = vpop.eup %279  ;;  %v203_v59 = vadd.f32 1.0, %v278_v54 }
 0x10f   :  { %v282_v60 = vpop.eup %281  ;;  %v206_v61 = vmul.f32 %v202_v56, %v174_v55  ;;  %v204_v63 = vadd.f32 1.0, %v280_v57 }
 0x110   :  { %v207_v0 = vmul.f32 %v203_v59, %v175_v58  ;;  %v205_v2 = vadd.f32 1.0, %v282_v60 }
 0x111   :  { %v208_v3 = vmul.f32 %v204_v63, %v176_v62 }
 0x112   :  { %v247_v4 = vpack.c.bf16 %v207_v0, %v206_v61  ;;  %v209_v5 = vmul.f32 %v205_v2, %v177_v1 }
 0x114   :  { %222 = vst [vmem:[%s367_s3] sm:$0xff] %v247_v4  ;;  %v248_v6 = vpack.c.bf16 %v209_v5, %v208_v3 }
 0x116   :  { %223 = vst [vmem:[%s367_s3 + $0x8] sm:$0xff] %v248_v6 }

// kernel: _lambda_.24
= control target key start
LH: loop header
LB: loop body
LE: loop exit
PB: predicated region body
PF: predicated region fallthrough
CT: control target
= control target key end

     0   :  { %v184_v0 = vmov 0.0   ;;  %vm185_vm0 = vmmov 0   ;;  %s239_s1 = inlined_call_operand.vmem [shape: bf16[128,128], index: 1, kind: input, shape index: {}]   ;;  %s240_s0 = inlined_call_operand.vmem [shape: bf16[2,128], index: 0, kind: input, shape index: {}]   ;;  %s241_s2 = inlined_call_operand.vmem [shape: f32[1,128], index: 2, kind: input, shape index: {}]   ;;  %s242_s3 = inlined_call_operand.vmem [shape: bf16[2,128], index: 3, kind: output, shape index: {}]  }
   0x1   :  { %152 = vmatprep.subr.bf16.mxu0 %v184_v0  ;;  %v174_v1 = vld [vmem:[%s239_s1] sm:$0xff]   ;;  %168 = vmatprep.mubr.msk.bf16.mxu0 %vm185_vm0, %v184_v0  ;;  %v175_v2 = vld [vmem:[%s239_s1 + $0x8] sm:$0xff]   ;;  %v176_v3 = vld [vmem:[%s239_s1 + $0x10] sm:$0xff]  }
   0x2   :  { %153 = vmatpush3.bf16.msra.mxu0 %v174_v1  ;;  %v177_v4 = vld [vmem:[%s239_s1 + $0x18] sm:$0xff]   ;;  %v178_v5 = vld [vmem:[%s239_s1 + $0x20] sm:$0xff]   ;;  %v179_v6 = vld [vmem:[%s239_s1 + $0x28] sm:$0xff]  }
   0x3   :  { %154 = vmatprep.subr.bf16.mxu0 %v184_v0  ;;  %v180_v7 = vld [vmem:[%s239_s1 + $0x30] sm:$0xff]   ;;  %v181_v8 = vld [vmem:[%s239_s1 + $0x38] sm:$0xff]   ;;  %v15_v9 = vld [vmem:[%s240_s0] sm:$0x1] }
   0x4   :  { %v134_v10 = vld [vmem:[%s241_s2] ss:$0 sm:$0xff] }
   0x6   :  { %155 = vmatpush3.bf16.msra.mxu0 %v175_v2 }
   0x7   :  { %156 = vmatprep.subr.bf16.mxu0 %v184_v0 }
   0xa   :  { %157 = vmatpush3.bf16.msra.mxu0 %v176_v3 }
   0xb   :  { %158 = vmatprep.subr.bf16.mxu0 %v184_v0 }
   0xe   :  { %159 = vmatpush3.bf16.msra.mxu0 %v177_v4 }
   0xf   :  { %160 = vmatprep.subr.bf16.mxu0 %v184_v0 }
  0x12   :  { %161 = vmatpush3.bf16.msra.mxu0 %v178_v5 }
  0x13   :  { %162 = vmatprep.subr.bf16.mxu0 %v184_v0 }
  0x16   :  { %163 = vmatpush3.bf16.msra.mxu0 %v179_v6 }
  0x17   :  { %164 = vmatprep.subr.bf16.mxu0 %v184_v0 }
  0x1a   :  { %165 = vmatpush3.bf16.msra.mxu0 %v180_v7 }
  0x1b   :  { %166 = vmatprep.subr.bf16.mxu0 %v184_v0 }
  0x1e   :  { %167 = vmatpush3.bf16.msra.mxu0 %v181_v8 }
  0x21   :  { %169 = vmatmul.mubr.bf16.vlgmr.msra.gmra.mrb[0].mxu0 %v15_v9 }
  0xf4   :  { %v121_v11 = vpop.f32.mrb[0].mxu0 }
  0xf5   :  { %v122_v12 = vadd.f32 %v134_v10, %v121_v11  ;;  %v170_v13 = vpop.f32.mrb[1].mxu0 }
  0xf6   :  { %v124_v14 = vpop.f32.mrb[2].mxu0 }
  0xf7   :  { %182 = vtanh.f32 %v122_v12  ;;  %v171_v15 = vpop.f32.mrb[3].mxu0 }
 0x101   :  { %v183_v16 = vpop.eup %182 }
 0x102   :  { %v128_v17 = vpack.c.bf16 %v183_v16, %v183_v16 }
 0x104   :  { %129 = vst [vmem:[%s242_s3] sm:$0x1] %v128_v17 }

// kernel: _lambda_.25
= control target key start
LH: loop header
LB: loop body
LE: loop exit
PB: predicated region body
PF: predicated region fallthrough
CT: control target
= control target key end

     0   :  { %v217_v1 = vmov 0.0   ;;  %vm218_vm0 = vmmov 0   ;;  %s282_s0 = inlined_call_operand.vmem [shape: bf16[2,128], index: 0, kind: input, shape index: {}]   ;;  %s283_s1 = inlined_call_operand.vmem [shape: bf16[128,3], index: 1, kind: input, shape index: {}]   ;;  %s284_s2 = inlined_call_operand.vmem [shape: f32[1,3], index: 2, kind: input, shape index: {}]   ;;  %s285_s3 = inlined_call_operand.hbm [shape: f32[2,3], index: 3, kind: output, shape index: {}]  }
   0x1   :  { %v185_v0 = vld [vmem:[%s283_s1] sm:$0xff]   ;;  %162 = vmatprep.subr.bf16.mxu0 %v217_v1  ;;  %v186_v2 = vld [vmem:[%s283_s1 + $0x8] sm:$0xff]   ;;  %178 = vmatprep.mubr.msk.bf16.mxu0 %vm218_vm0, %v217_v1  ;;  %v187_v3 = vld [vmem:[%s283_s1 + $0x10] sm:$0xff]  }
   0x2   :  { %163 = vmatpush3.bf16.msra.mxu0 %v185_v0 }
   0x3   :  { %164 = vmatprep.subr.bf16.mxu0 %v217_v1 }
   0x6   :  { %165 = vmatpush3.bf16.msra.mxu0 %v186_v2 }
   0x7   :  { %166 = vmatprep.subr.bf16.mxu0 %v217_v1 }
   0x8   :  { %8 = vsyncpa [#allocation3], 0  ;;  %v188_v4 = vld [vmem:[%s283_s1 + $0x18] sm:$0xff]   ;;  %v189_v5 = vld [vmem:[%s283_s1 + $0x20] sm:$0xff]   ;;  %s219_s5 = smov [#allocation2]   ;;  %vm128_vm1 = vcmask 17408  }
   0x9   :  { %v190_v6 = vld [vmem:[%s283_s1 + $0x28] sm:$0xff]   ;;  %v191_v7 = vld [vmem:[%s283_s1 + $0x30] sm:$0xff]   ;;  %v192_v8 = vld [vmem:[%s283_s1 + $0x38] sm:$0xff]   ;;  %s136_s6 = sshll.u32 %s219_s5, 4  ;;  %s137_s6 = int_to_ptr.vmem [resolvable:$true] %s136_s6 }
   0xa   :  { %167 = vmatpush3.bf16.msra.mxu0 %v187_v3  ;;  %v16_v9 = vld [vmem:[%s282_s0] sm:$0x1]  ;;  %s193_s1 = scalar_lea.vmem %s137_s6, 32  ;;  %p198_p1 = scmp.lt.s32.totalorder %s137_s6, %s137_s6 }
   0xb   :  { %168 = vmatprep.subr.bf16.mxu0 %v217_v1  ;;  %v144_v10 = vld [vmem:[%s284_s2] ss:$0 sm:$0xff]  ;;  %p194_p0 = scmp.ne.s32.totalorder %s137_s6, %s193_s1  ;;  %p199_p2 = scmp.lt.s32.totalorder %s193_s1, %s193_s1 }
   0xd   :  { %p200_p3 = por %p199_p2, %p198_p1 }
   0xe   :  { %169 = vmatpush3.bf16.msra.mxu0 %v188_v4 }
   0xf   :  { %170 = vmatprep.subr.bf16.mxu0 %v217_v1  ;;  %p201_p4 = pnand %p200_p3, %p194_p0 }
  0x12   :  { %171 = vmatpush3.bf16.msra.mxu0 %v189_v5 }
  0x13   :  { %172 = vmatprep.subr.bf16.mxu0 %v217_v1 }
  0x16   :  { %173 = vmatpush3.bf16.msra.mxu0 %v190_v6 }
  0x17   :  { %174 = vmatprep.subr.bf16.mxu0 %v217_v1 }
  0x1a   :  { %175 = vmatpush3.bf16.msra.mxu0 %v191_v7 }
  0x1b   :  { %176 = vmatprep.subr.bf16.mxu0 %v217_v1 }
  0x1e   :  { %177 = vmatpush3.bf16.msra.mxu0 %v192_v8 }
  0x21   :  { %179 = vmatmul.mubr.bf16.vlgmr.msra.gmra.mrb[0].mxu0 %v16_v9 }
  0xf4   :  { %v122_v11 = vpop.f32.mrb[0].mxu0 }
  0xf5   :  { %v123_v12 = vadd.f32 %v144_v10, %v122_v11  ;;  %v180_v13 = vpop.f32.mrb[1].mxu0 }
  0xf6   :  { %v125_v14 = vpop.f32.mrb[2].mxu0 }
  0xf7   :  { %v181_v15 = vpop.f32.mrb[3].mxu0  ;;  %129 = vst.msk [vmem:[#allocation2] sm:$0x3] %vm128_vm1, %v123_v12 }
  0xf8   :  { %204 = shalt.err (!%p201_p4)
}
  0xf9   :  { %s205_s2 = scalar_lea.hbm %s285_s3, 32 }
  0xfa   :  { %p206_p5 = scmp.ne.s32.totalorder %s285_s3, %s205_s2  ;;  %p209_p6 = scmp.lt.u32.totalorder %s205_s2, %s285_s3 }
  0xfc   :  { %p211_p7 = pnand %p209_p6, %p206_p5 }
  0xfe   :  { %214 = shalt.err (!%p211_p7)
}
  0xff   :  { %139 = dma.vmem_to_hbm [thread:$0]  %s137_s6, 32, %s285_s3, [#allocation3]  }
 0x100   :  { %215 = dma.done.wait [#allocation3], 32  }
 0x101   :  { %216 = vsyncadd [#allocation3], 4294967264 }
 0x102   :  { %143 = vsyncpa [#allocation3], 1 }

</bundles_post_ra>
